<compile_context>
chip_gen: v5e
topology: v5e:2x2
jax: 0.10.0
libtpu: 0.0.40
codegen_flags: <defaults>
</compile_context>

<pallas_src>
import jax
import jax.numpy as jnp
from jax.experimental import pallas as pl
from jax.experimental.pallas import tpu as pltpu


def lstm_classifier_kernel(x_ref, w_ih_t_ref, w_hh_t_ref, bias_ref,
                           w_dense_ref, b_dense_ref, out_ref):
    """LSTM recurrence over the full sequence, then dense + sigmoid.

    x_ref:        (seq_len, batch, input_size)  f32
    w_ih_t_ref:   (input_size, 4*Hp)            f32   gate order (i, f, o, g), lane-padded
    w_hh_t_ref:   (Hp, 4*Hp)                    f32   gate order (i, f, o, g), lane-padded
    bias_ref:     (1, 4*Hp)                     f32   b_ih + b_hh, reordered + zero-padded
    w_dense_ref:  (1, Hp)                       f32   dense.weight, zero-padded
    b_dense_ref:  (1, 1)                        f32
    out_ref:      (batch, 1)                    f32   sigmoid probabilities
    """
    seq_len, batch, input_size = x_ref.shape
    hp4 = w_hh_t_ref.shape[1]
    hp = hp4 // 4

    w_hh_t = w_hh_t_ref[...]                       # (Hp, 4Hp) — stays resident in vregs/VMEM
    bias = bias_ref[...]                           # (1, 4Hp)

    # --- Hoisted input projection (once, outside the serial recurrence) -------------
    x = x_ref[...]                                 # (S, B, I)
    if input_size == 1:
        # Pure VPU: (S, B, 1) * (1, 4Hp) broadcast -> (S, B, 4Hp); no MXU fill/drain.
        xproj = x * w_ih_t_ref[...] + bias
    else:
        x2 = x.reshape(seq_len * batch, input_size)
        xproj = (jnp.dot(x2, w_ih_t_ref[...], preferred_element_type=jnp.float32)
                 + bias).reshape(seq_len, batch, hp4)

    # --- Recurrence: fully unrolled static loop (seq_len is small & static) ---------
    h = jnp.zeros((batch, hp), jnp.float32)
    c = jnp.zeros((batch, hp), jnp.float32)
    for t in range(seq_len):
        gates = xproj[t] + jnp.dot(h, w_hh_t, preferred_element_type=jnp.float32)  # (B, 4Hp)
        # Gate layout is (i | f | o | g), each a full 128-lane block:
        sig = jax.nn.sigmoid(gates[:, 0:3 * hp])   # one wide EUP launch for i, f, o
        g_g = jnp.tanh(gates[:, 3 * hp:4 * hp])    # one tanh for g
        i_g = sig[:, 0:hp]                         # vreg-aligned lane-tile slices
        f_g = sig[:, hp:2 * hp]
        o_g = sig[:, 2 * hp:3 * hp]
        c = f_g * c + i_g * g_g
        h = o_g * jnp.tanh(c)

    # --- Head: VPU multiply + lane reduce instead of a degenerate N=1 MXU matmul ----
    logits = (jnp.sum(h * w_dense_ref[...], axis=-1, keepdims=True)
              + b_dense_ref[...])                  # (batch, 1)
    out_ref[...] = jax.nn.sigmoid(logits)


def _prepare_weights(params, hp):
    """Plain-JAX glue: reorder gates (i,f,g,o)->(i,f,o,g), transpose, lane-pad to Hp."""
    H = params["w_hh"].shape[1]
    order = (0, 1, 3, 2)                                           # i, f, o, g

    w_ih_g = [params["w_ih"][k * H:(k + 1) * H].T for k in order]  # each (I, H)
    w_hh_g = [params["w_hh"][k * H:(k + 1) * H].T for k in order]  # each (H, H)
    b_sum = params["b_ih"] + params["b_hh"]
    b_g = [b_sum[k * H:(k + 1) * H] for k in order]                # each (H,)

    pad_c = lambda a: jnp.pad(a, ((0, 0), (0, hp - H)))
    w_ih_t = jnp.concatenate([pad_c(w) for w in w_ih_g], axis=1)                     # (I, 4Hp)
    w_hh_t = jnp.concatenate(
        [jnp.pad(w, ((0, hp - H), (0, hp - H))) for w in w_hh_g], axis=1)            # (Hp, 4Hp)
    bias = jnp.concatenate([jnp.pad(b, (0, hp - H)) for b in b_g]).reshape(1, 4 * hp)  # (1, 4Hp)

    w_dense = jnp.pad(params["w_dense"], ((0, 0), (0, hp - H)))                      # (1, Hp)
    b_dense = params["b_dense"].reshape(1, 1)                                        # (1, 1)
    return w_ih_t, w_hh_t, bias, w_dense, b_dense


def classifier_forward(x, params):
    """x: (seq_len, batch, input_size=1) f32 -> (batch,) f32 probabilities."""
    seq_len, batch, input_size = x.shape
    H = params["w_hh"].shape[1]
    hp = max(128, ((H + 127) // 128) * 128)        # per-gate lane padding

    w_ih_t, w_hh_t, bias, w_dense, b_dense = _prepare_weights(params, hp)

    vmem = pl.BlockSpec(memory_space=pltpu.MemorySpace.VMEM)
    out = pl.pallas_call(
        lstm_classifier_kernel,
        out_shape=jax.ShapeDtypeStruct((batch, 1), jnp.float32),
        in_specs=[vmem] * 6,
        out_specs=vmem,
    )(x, w_ih_t, w_hh_t, bias, w_dense, b_dense)
    # matches torch.sigmoid(self.dense(hn).reshape(-1)) -> shape (batch,)
    return out.reshape(-1)


def init_params(key, input_size, hidden_size):
    """Same shapes as nn.LSTM(input, hidden, bias=True) + nn.Linear(hidden, 1)."""
    ks = jax.random.split(key, 6)
    k_rnn = 1.0 / jnp.sqrt(hidden_size)
    k_lin = 1.0 / jnp.sqrt(hidden_size)
    u = lambda k, shape, s: jax.random.uniform(k, shape, jnp.float32, -s, s)
    return {
        "w_ih": u(ks[0], (4 * hidden_size, input_size), k_rnn),   # weight_ih_l0
        "w_hh": u(ks[1], (4 * hidden_size, hidden_size), k_rnn),  # weight_hh_l0
        "b_ih": u(ks[2], (4 * hidden_size,), k_rnn),              # bias_ih_l0
        "b_hh": u(ks[3], (4 * hidden_size,), k_rnn),              # bias_hh_l0
        "w_dense": u(ks[4], (1, hidden_size), k_lin),             # dense.weight
        "b_dense": u(ks[5], (1,), k_lin),                         # dense.bias
    }


def reference_forward(x, params):
    """Pure-JAX reference mirroring PyTorch LSTM semantics (original gate order)."""
    seq_len, batch, _ = x.shape
    hidden = params["w_hh"].shape[1]
    h = jnp.zeros((batch, hidden), jnp.float32)
    c = jnp.zeros((batch, hidden), jnp.float32)
    b = params["b_ih"] + params["b_hh"]
    for t in range(seq_len):
        gates = x[t] @ params["w_ih"].T + h @ params["w_hh"].T + b
        i_g = jax.nn.sigmoid(gates[:, 0 * hidden:1 * hidden])
        f_g = jax.nn.sigmoid(gates[:, 1 * hidden:2 * hidden])
        g_g = jnp.tanh(gates[:, 2 * hidden:3 * hidden])
        o_g = jax.nn.sigmoid(gates[:, 3 * hidden:4 * hidden])
        c = f_g * c + i_g * g_g
        h = o_g * jnp.tanh(c)
    logits = h @ params["w_dense"].T + params["b_dense"]
    return jax.nn.sigmoid(logits).reshape(-1)


if __name__ == "__main__":
    seq_len, batch, input_size, hidden_size = 8, 2, 1, 32

    key = jax.random.PRNGKey(0)
    k_x, k_p = jax.random.split(key)
    x = jax.random.normal(k_x, (seq_len, batch, input_size), jnp.float32)
    params = init_params(k_p, input_size, hidden_size)

    out = classifier_forward(x, params)
    out = jax.block_until_ready(out)

    ref = reference_forward(x, params)
    assert out.shape == (batch,)
    assert jnp.allclose(out, ref, atol=1e-5, rtol=1e-5), (out, ref)

    print("KERNEL_OK")
</pallas_src>

<mosaic_0001>
module attributes {stable_mosaic.version = 11 : i64} {
  func.func @lstm_classifier_kernel(%arg0: memref<8x2x1xf32, #tpu.memory_space<vmem>>, %arg1: memref<1x512xf32, #tpu.memory_space<vmem>>, %arg2: memref<128x512xf32, #tpu.memory_space<vmem>>, %arg3: memref<1x512xf32, #tpu.memory_space<vmem>>, %arg4: memref<1x128xf32, #tpu.memory_space<vmem>>, %arg5: memref<1x1xf32, #tpu.memory_space<vmem>>, %arg6: memref<2x1xf32, #tpu.memory_space<vmem>>) attributes {dimension_semantics = [], scalar_prefetch = 0 : i64, scratch_operands = 0 : i64, tpu.core_type = #tpu.core_type<tc>} {
    %c0 = arith.constant 0 : index
    %c0_0 = arith.constant 0 : index
    %0 = vector.load %arg2[%c0, %c0_0] : memref<128x512xf32, #tpu.memory_space<vmem>>, vector<128x512xf32>
    %c0_1 = arith.constant 0 : index
    %c0_2 = arith.constant 0 : index
    %1 = vector.load %arg3[%c0_1, %c0_2] : memref<1x512xf32, #tpu.memory_space<vmem>>, vector<1x512xf32>
    %c0_3 = arith.constant 0 : index
    %c0_4 = arith.constant 0 : index
    %c0_5 = arith.constant 0 : index
    %2 = vector.load %arg0[%c0_3, %c0_4, %c0_5] : memref<8x2x1xf32, #tpu.memory_space<vmem>>, vector<8x2x1xf32>
    %c0_6 = arith.constant 0 : index
    %c0_7 = arith.constant 0 : index
    %3 = vector.load %arg1[%c0_6, %c0_7] : memref<1x512xf32, #tpu.memory_space<vmem>>, vector<1x512xf32>
    %4 = vector.shape_cast %3 : vector<1x512xf32> to vector<1x1x512xf32>
    %5 = vector.broadcast %2 : vector<8x2x1xf32> to vector<8x2x512xf32>
    %6 = vector.broadcast %4 : vector<1x1x512xf32> to vector<8x2x512xf32>
    %7 = arith.mulf %5, %6 : vector<8x2x512xf32>
    %8 = vector.shape_cast %1 : vector<1x512xf32> to vector<1x1x512xf32>
    %9 = vector.broadcast %8 : vector<1x1x512xf32> to vector<8x2x512xf32>
    %10 = arith.addf %7, %9 : vector<8x2x512xf32>
    %cst = arith.constant 0.000000e+00 : f32
    %11 = vector.broadcast %cst : f32 to vector<2x128xf32>
    %cst_8 = arith.constant 0.000000e+00 : f32
    %12 = vector.broadcast %cst_8 : f32 to vector<2x128xf32>
    %13 = vector.extract_strided_slice %10 {offsets = [0, 0, 0], sizes = [1, 2, 512], strides = [1, 1, 1]} : vector<8x2x512xf32> to vector<1x2x512xf32>
    %14 = vector.shape_cast %13 : vector<1x2x512xf32> to vector<2x512xf32>
    %cst_9 = arith.constant dense<0.000000e+00> : vector<2x512xf32>
    %15 = tpu.matmul %11, %0, %cst_9 {dimension_numbers = #tpu.dot_dimension_numbers<[1], [0], [0], [1], [0, 0, 1, 1], [], []>} : vector<2x128xf32>, vector<128x512xf32>, vector<2x512xf32> -> vector<2x512xf32>
    %16 = arith.addf %14, %15 : vector<2x512xf32>
    %17 = vector.extract_strided_slice %16 {offsets = [0, 0], sizes = [2, 384], strides = [1, 1]} : vector<2x512xf32> to vector<2x384xf32>
    %18 = arith.negf %17 : vector<2x384xf32>
    %19 = math.exp %18 : vector<2x384xf32>
    %cst_10 = arith.constant 1.000000e+00 : f32
    %20 = vector.broadcast %cst_10 : f32 to vector<2x384xf32>
    %21 = arith.addf %20, %19 : vector<2x384xf32>
    %22 = arith.divf %20, %21 : vector<2x384xf32>
    %23 = vector.extract_strided_slice %16 {offsets = [0, 384], sizes = [2, 128], strides = [1, 1]} : vector<2x512xf32> to vector<2x128xf32>
    %24 = math.tanh %23 : vector<2x128xf32>
    %25 = vector.extract_strided_slice %22 {offsets = [0, 0], sizes = [2, 128], strides = [1, 1]} : vector<2x384xf32> to vector<2x128xf32>
    %26 = vector.extract_strided_slice %22 {offsets = [0, 128], sizes = [2, 128], strides = [1, 1]} : vector<2x384xf32> to vector<2x128xf32>
    %27 = vector.extract_strided_slice %22 {offsets = [0, 256], sizes = [2, 128], strides = [1, 1]} : vector<2x384xf32> to vector<2x128xf32>
    %28 = arith.mulf %26, %12 : vector<2x128xf32>
    %29 = arith.mulf %25, %24 : vector<2x128xf32>
    %30 = arith.addf %28, %29 : vector<2x128xf32>
    %31 = math.tanh %30 : vector<2x128xf32>
    %32 = arith.mulf %27, %31 : vector<2x128xf32>
    %33 = vector.extract_strided_slice %10 {offsets = [1, 0, 0], sizes = [1, 2, 512], strides = [1, 1, 1]} : vector<8x2x512xf32> to vector<1x2x512xf32>
    %34 = vector.shape_cast %33 : vector<1x2x512xf32> to vector<2x512xf32>
    %cst_11 = arith.constant dense<0.000000e+00> : vector<2x512xf32>
    %35 = tpu.matmul %32, %0, %cst_11 {dimension_numbers = #tpu.dot_dimension_numbers<[1], [0], [0], [1], [0, 0, 1, 1], [], []>} : vector<2x128xf32>, vector<128x512xf32>, vector<2x512xf32> -> vector<2x512xf32>
    %36 = arith.addf %34, %35 : vector<2x512xf32>
    %37 = vector.extract_strided_slice %36 {offsets = [0, 0], sizes = [2, 384], strides = [1, 1]} : vector<2x512xf32> to vector<2x384xf32>
    %38 = arith.negf %37 : vector<2x384xf32>
    %39 = math.exp %38 : vector<2x384xf32>
    %cst_12 = arith.constant 1.000000e+00 : f32
    %40 = vector.broadcast %cst_12 : f32 to vector<2x384xf32>
    %41 = arith.addf %40, %39 : vector<2x384xf32>
    %42 = arith.divf %40, %41 : vector<2x384xf32>
    %43 = vector.extract_strided_slice %36 {offsets = [0, 384], sizes = [2, 128], strides = [1, 1]} : vector<2x512xf32> to vector<2x128xf32>
    %44 = math.tanh %43 : vector<2x128xf32>
    %45 = vector.extract_strided_slice %42 {offsets = [0, 0], sizes = [2, 128], strides = [1, 1]} : vector<2x384xf32> to vector<2x128xf32>
    %46 = vector.extract_strided_slice %42 {offsets = [0, 128], sizes = [2, 128], strides = [1, 1]} : vector<2x384xf32> to vector<2x128xf32>
    %47 = vector.extract_strided_slice %42 {offsets = [0, 256], sizes = [2, 128], strides = [1, 1]} : vector<2x384xf32> to vector<2x128xf32>
    %48 = arith.mulf %46, %30 : vector<2x128xf32>
    %49 = arith.mulf %45, %44 : vector<2x128xf32>
    %50 = arith.addf %48, %49 : vector<2x128xf32>
    %51 = math.tanh %50 : vector<2x128xf32>
    %52 = arith.mulf %47, %51 : vector<2x128xf32>
    %53 = vector.extract_strided_slice %10 {offsets = [2, 0, 0], sizes = [1, 2, 512], strides = [1, 1, 1]} : vector<8x2x512xf32> to vector<1x2x512xf32>
    %54 = vector.shape_cast %53 : vector<1x2x512xf32> to vector<2x512xf32>
    %cst_13 = arith.constant dense<0.000000e+00> : vector<2x512xf32>
    %55 = tpu.matmul %52, %0, %cst_13 {dimension_numbers = #tpu.dot_dimension_numbers<[1], [0], [0], [1], [0, 0, 1, 1], [], []>} : vector<2x128xf32>, vector<128x512xf32>, vector<2x512xf32> -> vector<2x512xf32>
    %56 = arith.addf %54, %55 : vector<2x512xf32>
    %57 = vector.extract_strided_slice %56 {offsets = [0, 0], sizes = [2, 384], strides = [1, 1]} : vector<2x512xf32> to vector<2x384xf32>
    %58 = arith.negf %57 : vector<2x384xf32>
    %59 = math.exp %58 : vector<2x384xf32>
    %cst_14 = arith.constant 1.000000e+00 : f32
    %60 = vector.broadcast %cst_14 : f32 to vector<2x384xf32>
    %61 = arith.addf %60, %59 : vector<2x384xf32>
    %62 = arith.divf %60, %61 : vector<2x384xf32>
    %63 = vector.extract_strided_slice %56 {offsets = [0, 384], sizes = [2, 128], strides = [1, 1]} : vector<2x512xf32> to vector<2x128xf32>
    %64 = math.tanh %63 : vector<2x128xf32>
    %65 = vector.extract_strided_slice %62 {offsets = [0, 0], sizes = [2, 128], strides = [1, 1]} : vector<2x384xf32> to vector<2x128xf32>
    %66 = vector.extract_strided_slice %62 {offsets = [0, 128], sizes = [2, 128], strides = [1, 1]} : vector<2x384xf32> to vector<2x128xf32>
    %67 = vector.extract_strided_slice %62 {offsets = [0, 256], sizes = [2, 128], strides = [1, 1]} : vector<2x384xf32> to vector<2x128xf32>
    %68 = arith.mulf %66, %50 : vector<2x128xf32>
    %69 = arith.mulf %65, %64 : vector<2x128xf32>
    %70 = arith.addf %68, %69 : vector<2x128xf32>
    %71 = math.tanh %70 : vector<2x128xf32>
    %72 = arith.mulf %67, %71 : vector<2x128xf32>
    %73 = vector.extract_strided_slice %10 {offsets = [3, 0, 0], sizes = [1, 2, 512], strides = [1, 1, 1]} : vector<8x2x512xf32> to vector<1x2x512xf32>
    %74 = vector.shape_cast %73 : vector<1x2x512xf32> to vector<2x512xf32>
    %cst_15 = arith.constant dense<0.000000e+00> : vector<2x512xf32>
    %75 = tpu.matmul %72, %0, %cst_15 {dimension_numbers = #tpu.dot_dimension_numbers<[1], [0], [0], [1], [0, 0, 1, 1], [], []>} : vector<2x128xf32>, vector<128x512xf32>, vector<2x512xf32> -> vector<2x512xf32>
    %76 = arith.addf %74, %75 : vector<2x512xf32>
    %77 = vector.extract_strided_slice %76 {offsets = [0, 0], sizes = [2, 384], strides = [1, 1]} : vector<2x512xf32> to vector<2x384xf32>
    %78 = arith.negf %77 : vector<2x384xf32>
    %79 = math.exp %78 : vector<2x384xf32>
    %cst_16 = arith.constant 1.000000e+00 : f32
    %80 = vector.broadcast %cst_16 : f32 to vector<2x384xf32>
    %81 = arith.addf %80, %79 : vector<2x384xf32>
    %82 = arith.divf %80, %81 : vector<2x384xf32>
    %83 = vector.extract_strided_slice %76 {offsets = [0, 384], sizes = [2, 128], strides = [1, 1]} : vector<2x512xf32> to vector<2x128xf32>
    %84 = math.tanh %83 : vector<2x128xf32>
    %85 = vector.extract_strided_slice %82 {offsets = [0, 0], sizes = [2, 128], strides = [1, 1]} : vector<2x384xf32> to vector<2x128xf32>
    %86 = vector.extract_strided_slice %82 {offsets = [0, 128], sizes = [2, 128], strides = [1, 1]} : vector<2x384xf32> to vector<2x128xf32>
    %87 = vector.extract_strided_slice %82 {offsets = [0, 256], sizes = [2, 128], strides = [1, 1]} : vector<2x384xf32> to vector<2x128xf32>
    %88 = arith.mulf %86, %70 : vector<2x128xf32>
    %89 = arith.mulf %85, %84 : vector<2x128xf32>
    %90 = arith.addf %88, %89 : vector<2x128xf32>
    %91 = math.tanh %90 : vector<2x128xf32>
    %92 = arith.mulf %87, %91 : vector<2x128xf32>
    %93 = vector.extract_strided_slice %10 {offsets = [4, 0, 0], sizes = [1, 2, 512], strides = [1, 1, 1]} : vector<8x2x512xf32> to vector<1x2x512xf32>
    %94 = vector.shape_cast %93 : vector<1x2x512xf32> to vector<2x512xf32>
    %cst_17 = arith.constant dense<0.000000e+00> : vector<2x512xf32>
    %95 = tpu.matmul %92, %0, %cst_17 {dimension_numbers = #tpu.dot_dimension_numbers<[1], [0], [0], [1], [0, 0, 1, 1], [], []>} : vector<2x128xf32>, vector<128x512xf32>, vector<2x512xf32> -> vector<2x512xf32>
    %96 = arith.addf %94, %95 : vector<2x512xf32>
    %97 = vector.extract_strided_slice %96 {offsets = [0, 0], sizes = [2, 384], strides = [1, 1]} : vector<2x512xf32> to vector<2x384xf32>
    %98 = arith.negf %97 : vector<2x384xf32>
    %99 = math.exp %98 : vector<2x384xf32>
    %cst_18 = arith.constant 1.000000e+00 : f32
    %100 = vector.broadcast %cst_18 : f32 to vector<2x384xf32>
    %101 = arith.addf %100, %99 : vector<2x384xf32>
    %102 = arith.divf %100, %101 : vector<2x384xf32>
    %103 = vector.extract_strided_slice %96 {offsets = [0, 384], sizes = [2, 128], strides = [1, 1]} : vector<2x512xf32> to vector<2x128xf32>
    %104 = math.tanh %103 : vector<2x128xf32>
    %105 = vector.extract_strided_slice %102 {offsets = [0, 0], sizes = [2, 128], strides = [1, 1]} : vector<2x384xf32> to vector<2x128xf32>
    %106 = vector.extract_strided_slice %102 {offsets = [0, 128], sizes = [2, 128], strides = [1, 1]} : vector<2x384xf32> to vector<2x128xf32>
    %107 = vector.extract_strided_slice %102 {offsets = [0, 256], sizes = [2, 128], strides = [1, 1]} : vector<2x384xf32> to vector<2x128xf32>
    %108 = arith.mulf %106, %90 : vector<2x128xf32>
    %109 = arith.mulf %105, %104 : vector<2x128xf32>
    %110 = arith.addf %108, %109 : vector<2x128xf32>
    %111 = math.tanh %110 : vector<2x128xf32>
    %112 = arith.mulf %107, %111 : vector<2x128xf32>
    %113 = vector.extract_strided_slice %10 {offsets = [5, 0, 0], sizes = [1, 2, 512], strides = [1, 1, 1]} : vector<8x2x512xf32> to vector<1x2x512xf32>
    %114 = vector.shape_cast %113 : vector<1x2x512xf32> to vector<2x512xf32>
    %cst_19 = arith.constant dense<0.000000e+00> : vector<2x512xf32>
    %115 = tpu.matmul %112, %0, %cst_19 {dimension_numbers = #tpu.dot_dimension_numbers<[1], [0], [0], [1], [0, 0, 1, 1], [], []>} : vector<2x128xf32>, vector<128x512xf32>, vector<2x512xf32> -> vector<2x512xf32>
    %116 = arith.addf %114, %115 : vector<2x512xf32>
    %117 = vector.extract_strided_slice %116 {offsets = [0, 0], sizes = [2, 384], strides = [1, 1]} : vector<2x512xf32> to vector<2x384xf32>
    %118 = arith.negf %117 : vector<2x384xf32>
    %119 = math.exp %118 : vector<2x384xf32>
    %cst_20 = arith.constant 1.000000e+00 : f32
    %120 = vector.broadcast %cst_20 : f32 to vector<2x384xf32>
    %121 = arith.addf %120, %119 : vector<2x384xf32>
    %122 = arith.divf %120, %121 : vector<2x384xf32>
    %123 = vector.extract_strided_slice %116 {offsets = [0, 384], sizes = [2, 128], strides = [1, 1]} : vector<2x512xf32> to vector<2x128xf32>
    %124 = math.tanh %123 : vector<2x128xf32>
    %125 = vector.extract_strided_slice %122 {offsets = [0, 0], sizes = [2, 128], strides = [1, 1]} : vector<2x384xf32> to vector<2x128xf32>
    %126 = vector.extract_strided_slice %122 {offsets = [0, 128], sizes = [2, 128], strides = [1, 1]} : vector<2x384xf32> to vector<2x128xf32>
    %127 = vector.extract_strided_slice %122 {offsets = [0, 256], sizes = [2, 128], strides = [1, 1]} : vector<2x384xf32> to vector<2x128xf32>
    %128 = arith.mulf %126, %110 : vector<2x128xf32>
    %129 = arith.mulf %125, %124 : vector<2x128xf32>
    %130 = arith.addf %128, %129 : vector<2x128xf32>
    %131 = math.tanh %130 : vector<2x128xf32>
    %132 = arith.mulf %127, %131 : vector<2x128xf32>
    %133 = vector.extract_strided_slice %10 {offsets = [6, 0, 0], sizes = [1, 2, 512], strides = [1, 1, 1]} : vector<8x2x512xf32> to vector<1x2x512xf32>
    %134 = vector.shape_cast %133 : vector<1x2x512xf32> to vector<2x512xf32>
    %cst_21 = arith.constant dense<0.000000e+00> : vector<2x512xf32>
    %135 = tpu.matmul %132, %0, %cst_21 {dimension_numbers = #tpu.dot_dimension_numbers<[1], [0], [0], [1], [0, 0, 1, 1], [], []>} : vector<2x128xf32>, vector<128x512xf32>, vector<2x512xf32> -> vector<2x512xf32>
    %136 = arith.addf %134, %135 : vector<2x512xf32>
    %137 = vector.extract_strided_slice %136 {offsets = [0, 0], sizes = [2, 384], strides = [1, 1]} : vector<2x512xf32> to vector<2x384xf32>
    %138 = arith.negf %137 : vector<2x384xf32>
    %139 = math.exp %138 : vector<2x384xf32>
    %cst_22 = arith.constant 1.000000e+00 : f32
    %140 = vector.broadcast %cst_22 : f32 to vector<2x384xf32>
    %141 = arith.addf %140, %139 : vector<2x384xf32>
    %142 = arith.divf %140, %141 : vector<2x384xf32>
    %143 = vector.extract_strided_slice %136 {offsets = [0, 384], sizes = [2, 128], strides = [1, 1]} : vector<2x512xf32> to vector<2x128xf32>
    %144 = math.tanh %143 : vector<2x128xf32>
    %145 = vector.extract_strided_slice %142 {offsets = [0, 0], sizes = [2, 128], strides = [1, 1]} : vector<2x384xf32> to vector<2x128xf32>
    %146 = vector.extract_strided_slice %142 {offsets = [0, 128], sizes = [2, 128], strides = [1, 1]} : vector<2x384xf32> to vector<2x128xf32>
    %147 = vector.extract_strided_slice %142 {offsets = [0, 256], sizes = [2, 128], strides = [1, 1]} : vector<2x384xf32> to vector<2x128xf32>
    %148 = arith.mulf %146, %130 : vector<2x128xf32>
    %149 = arith.mulf %145, %144 : vector<2x128xf32>
    %150 = arith.addf %148, %149 : vector<2x128xf32>
    %151 = math.tanh %150 : vector<2x128xf32>
    %152 = arith.mulf %147, %151 : vector<2x128xf32>
    %153 = vector.extract_strided_slice %10 {offsets = [7, 0, 0], sizes = [1, 2, 512], strides = [1, 1, 1]} : vector<8x2x512xf32> to vector<1x2x512xf32>
    %154 = vector.shape_cast %153 : vector<1x2x512xf32> to vector<2x512xf32>
    %cst_23 = arith.constant dense<0.000000e+00> : vector<2x512xf32>
    %155 = tpu.matmul %152, %0, %cst_23 {dimension_numbers = #tpu.dot_dimension_numbers<[1], [0], [0], [1], [0, 0, 1, 1], [], []>} : vector<2x128xf32>, vector<128x512xf32>, vector<2x512xf32> -> vector<2x512xf32>
    %156 = arith.addf %154, %155 : vector<2x512xf32>
    %157 = vector.extract_strided_slice %156 {offsets = [0, 0], sizes = [2, 384], strides = [1, 1]} : vector<2x512xf32> to vector<2x384xf32>
    %158 = arith.negf %157 : vector<2x384xf32>
    %159 = math.exp %158 : vector<2x384xf32>
    %cst_24 = arith.constant 1.000000e+00 : f32
    %160 = vector.broadcast %cst_24 : f32 to vector<2x384xf32>
    %161 = arith.addf %160, %159 : vector<2x384xf32>
    %162 = arith.divf %160, %161 : vector<2x384xf32>
    %163 = vector.extract_strided_slice %156 {offsets = [0, 384], sizes = [2, 128], strides = [1, 1]} : vector<2x512xf32> to vector<2x128xf32>
    %164 = math.tanh %163 : vector<2x128xf32>
    %165 = vector.extract_strided_slice %162 {offsets = [0, 0], sizes = [2, 128], strides = [1, 1]} : vector<2x384xf32> to vector<2x128xf32>
    %166 = vector.extract_strided_slice %162 {offsets = [0, 128], sizes = [2, 128], strides = [1, 1]} : vector<2x384xf32> to vector<2x128xf32>
    %167 = vector.extract_strided_slice %162 {offsets = [0, 256], sizes = [2, 128], strides = [1, 1]} : vector<2x384xf32> to vector<2x128xf32>
    %168 = arith.mulf %166, %150 : vector<2x128xf32>
    %169 = arith.mulf %165, %164 : vector<2x128xf32>
    %170 = arith.addf %168, %169 : vector<2x128xf32>
    %171 = math.tanh %170 : vector<2x128xf32>
    %172 = arith.mulf %167, %171 : vector<2x128xf32>
    %c0_25 = arith.constant 0 : index
    %c0_26 = arith.constant 0 : index
    %173 = vector.load %arg4[%c0_25, %c0_26] : memref<1x128xf32, #tpu.memory_space<vmem>>, vector<1x128xf32>
    %174 = vector.broadcast %173 : vector<1x128xf32> to vector<2x128xf32>
    %175 = arith.mulf %172, %174 : vector<2x128xf32>
    %cst_27 = arith.constant dense<0.000000e+00> : vector<2xf32>
    %176 = vector.multi_reduction <add>, %175, %cst_27 [1] : vector<2x128xf32> to vector<2xf32>
    %177 = vector.shape_cast %176 : vector<2xf32> to vector<2x1xf32>
    %c0_28 = arith.constant 0 : index
    %c0_29 = arith.constant 0 : index
    %178 = vector.load %arg5[%c0_28, %c0_29] : memref<1x1xf32, #tpu.memory_space<vmem>>, vector<1x1xf32>
    %179 = vector.broadcast %178 : vector<1x1xf32> to vector<2x1xf32>
    %180 = arith.addf %177, %179 : vector<2x1xf32>
    %181 = arith.negf %180 : vector<2x1xf32>
    %182 = math.exp %181 : vector<2x1xf32>
    %cst_30 = arith.constant 1.000000e+00 : f32
    %183 = vector.broadcast %cst_30 : f32 to vector<2x1xf32>
    %184 = arith.addf %183, %182 : vector<2x1xf32>
    %185 = arith.divf %183, %184 : vector<2x1xf32>
    %c0_31 = arith.constant 0 : index
    %c0_32 = arith.constant 0 : index
    %186 = vector.load %arg6[%c0_31, %c0_32] : memref<2x1xf32, #tpu.memory_space<vmem>>, vector<2x1xf32>
    tpu.vector_store %arg6[%c0_31, %c0_32], %185 {strides = array<i32>} : memref<2x1xf32, #tpu.memory_space<vmem>>, vector<2x1xf32>,
    return
  }
}

</mosaic_0001>

<bundles_post_ra>
// kernel: tpu_custom_call.1
= control target key start
LH: loop header
LB: loop body
LE: loop exit
PB: predicated region body
PF: predicated region fallthrough
CT: control target
= control target key end

     0   :  { %s2668_s0 = inlined_call_operand.vmem [shape: f32[8,2,1], index: 0, kind: input, shape index: {}]   ;;  %s2669_s1 = inlined_call_operand.vmem [shape: f32[1,512], index: 1, kind: input, shape index: {}]   ;;  %s2670_s2 = inlined_call_operand.hbm [shape: f32[128,512], index: 2, kind: input, shape index: {}]   ;;  %s2671_s3 = inlined_call_operand.vmem [shape: f32[1,512], index: 3, kind: input, shape index: {}]   ;;  %s2672_s4 = inlined_call_operand.vmem [shape: f32[1,128], index: 4, kind: input, shape index: {}]   ;;  %s2673_s5 = inlined_call_operand.<no memory space> [shape: f32[1,1], index: 5, kind: input, shape index: {}]   ;;  %s2674_s6 = inlined_call_operand.vmem [shape: f32[2,1], index: 6, kind: output, shape index: {}]  }
   0x1   :  { %v11_v0 = vstv %s2673_s5 }
   0x2   :  { %12 = vst [vmem:[#allocation2] sm:$0x1] %v11_v0 }
   0x3   :  { %13 = vsyncpa [#allocation4], 0  ;;  %s22_s25 = sshll.u32 %s2670_s2, 4  ;;  %s1710_s26 = smov [#allocation3]   ;;  %s23_s25 = int_to_ptr.hbm [resolvable:$true] %s22_s25 }
   0x4   :  { %s24_s27 = sshll.u32 %s1710_s26, 4  ;;  %s1711_s28 = smov 512   ;;  %s25_s27 = int_to_ptr.vmem [resolvable:$true] %s24_s27 }
   0x5   :  { %s1712_s29 = smov 32  }
   0x6   :  { %30 = dma.hbm_to_vmem [thread:$0]  %s23_s25, 8192, %s25_s27, [#allocation4], %s1711_s28, %s1711_s28, %s1712_s29  }
   0x7   :  { %1708 = dma.done.wait [#allocation4], 8192  }
   0x8   :  { %1709 = vsyncadd [#allocation4], 4294959104  ;;  %v1713_v1 = vmov 0   ;;  %v1756_v2 = vld [vmem:[#allocation3 + $0x1e0] sm:$0xff]  ;;  %v1758_v3 = vld [vmem:[#allocation3 + $0x1e8] sm:$0xff] }
   0x9   :  { %1483 = vset.pattern.permute.xlu0 %v1713_v1  ;;  %1484 = vset.pattern.permute.xlu1 %v1713_v1  ;;  %v1760_v4 = vld [vmem:[#allocation3 + $0x1f0] sm:$0xff]  ;;  %v1764_v5 = vld [vmem:[#allocation3 + $0x1f8] sm:$0xff]  ;;  %v1766_v6 = vld [vmem:[#allocation3 + $0x1c0] sm:$0xff] }
   0xa   :  { %1485 = vset.pattern.permute.xlu2 %v1713_v1  ;;  %237 = vmatpush.msra.mxu0 %v1756_v2  ;;  %v1768_v7 = vld [vmem:[#allocation3 + $0x1c8] sm:$0xff]  ;;  %v1772_v8 = vld [vmem:[#allocation3 + $0x1d0] sm:$0xff]  ;;  %v1774_v9 = vld [vmem:[#allocation3 + $0x1d8] sm:$0xff] }
   0xb   :  { %257 = vmatpush.msra.mxu1 %v1758_v3  ;;  %277 = vmatpush.msra.mxu2 %v1760_v4  ;;  %v1776_v10 = vld [vmem:[#allocation3 + $0x1a0] sm:$0xff]  ;;  %v1780_v11 = vld [vmem:[#allocation3 + $0x1a8] sm:$0xff]  ;;  %v1782_v12 = vld [vmem:[#allocation3 + $0x1b0] sm:$0xff] }
   0xc   :  { %297 = vmatpush.msra.mxu3 %v1764_v5  ;;  %238 = vmatpush.msra.mxu0 %v1766_v6  ;;  %v1784_v13 = vld [vmem:[#allocation3 + $0x1b8] sm:$0xff]  ;;  %v1788_v14 = vld [vmem:[#allocation3 + $0x180] sm:$0xff]  ;;  %v1790_v15 = vld [vmem:[#allocation3 + $0x188] sm:$0xff] }
   0xd   :  { %258 = vmatpush.msra.mxu1 %v1768_v7  ;;  %278 = vmatpush.msra.mxu2 %v1772_v8  ;;  %v1794_v16 = vld [vmem:[#allocation3 + $0x190] sm:$0xff]  ;;  %v1796_v17 = vld [vmem:[#allocation3 + $0x198] sm:$0xff]  ;;  %v1800_v18 = vld [vmem:[#allocation3 + $0x160] sm:$0xff] }
   0xe   :  { %298 = vmatpush.msra.mxu3 %v1774_v9  ;;  %239 = vmatpush.msra.mxu0 %v1776_v10  ;;  %v1802_v19 = vld [vmem:[#allocation3 + $0x168] sm:$0xff]  ;;  %v1806_v20 = vld [vmem:[#allocation3 + $0x170] sm:$0xff]  ;;  %v1808_v21 = vld [vmem:[#allocation3 + $0x178] sm:$0xff] }
   0xf   :  { %259 = vmatpush.msra.mxu1 %v1780_v11  ;;  %279 = vmatpush.msra.mxu2 %v1782_v12  ;;  %v1812_v22 = vld [vmem:[#allocation3 + $0x140] sm:$0xff]  ;;  %v1814_v23 = vld [vmem:[#allocation3 + $0x148] sm:$0xff]  ;;  %v1818_v24 = vld [vmem:[#allocation3 + $0x150] sm:$0xff] }
  0x10   :  { %299 = vmatpush.msra.mxu3 %v1784_v13  ;;  %240 = vmatpush.msra.mxu0 %v1788_v14  ;;  %v1820_v25 = vld [vmem:[#allocation3 + $0x158] sm:$0xff]  ;;  %v1824_v26 = vld [vmem:[#allocation3 + $0x120] sm:$0xff]  ;;  %v1826_v27 = vld [vmem:[#allocation3 + $0x128] sm:$0xff] }
  0x11   :  { %260 = vmatpush.msra.mxu1 %v1790_v15  ;;  %280 = vmatpush.msra.mxu2 %v1794_v16  ;;  %v1830_v28 = vld [vmem:[#allocation3 + $0x130] sm:$0xff]  ;;  %v1832_v29 = vld [vmem:[#allocation3 + $0x138] sm:$0xff]  ;;  %v1836_v30 = vld [vmem:[#allocation3 + $0x100] sm:$0xff] }
  0x12   :  { %300 = vmatpush.msra.mxu3 %v1796_v17  ;;  %241 = vmatpush.msra.mxu0 %v1800_v18  ;;  %v1838_v31 = vld [vmem:[#allocation3 + $0x108] sm:$0xff]  ;;  %v1842_v32 = vld [vmem:[#allocation3 + $0x110] sm:$0xff]  ;;  %v1844_v33 = vld [vmem:[#allocation3 + $0x118] sm:$0xff] }
  0x13   :  { %261 = vmatpush.msra.mxu1 %v1802_v19  ;;  %281 = vmatpush.msra.mxu2 %v1806_v20  ;;  %v1848_v34 = vld [vmem:[#allocation3 + $0xe0] sm:$0xff]  ;;  %v1850_v35 = vld [vmem:[#allocation3 + $0xe8] sm:$0xff]  ;;  %v1854_v36 = vld [vmem:[#allocation3 + $0xf0] sm:$0xff] }
  0x14   :  { %301 = vmatpush.msra.mxu3 %v1808_v21  ;;  %242 = vmatpush.msra.mxu0 %v1812_v22  ;;  %v1856_v37 = vld [vmem:[#allocation3 + $0xf8] sm:$0xff]  ;;  %v1860_v38 = vld [vmem:[#allocation3 + $0xc0] sm:$0xff]  ;;  %v1862_v39 = vld [vmem:[#allocation3 + $0xc8] sm:$0xff] }
  0x15   :  { %262 = vmatpush.msra.mxu1 %v1814_v23  ;;  %282 = vmatpush.msra.mxu2 %v1818_v24  ;;  %v1866_v40 = vld [vmem:[#allocation3 + $0xd0] sm:$0xff]  ;;  %v1868_v41 = vld [vmem:[#allocation3 + $0xd8] sm:$0xff]  ;;  %v1872_v42 = vld [vmem:[#allocation3 + $0xa0] sm:$0xff] }
  0x16   :  { %302 = vmatpush.msra.mxu3 %v1820_v25  ;;  %243 = vmatpush.msra.mxu0 %v1824_v26  ;;  %2806 = vst [vmem:[#allocation6_spill] sm:$0xff] %v1866_v40  ;;  %v1874_v43 = vld [vmem:[#allocation3 + $0xa8] sm:$0xff]  ;;  %v1878_v44 = vld [vmem:[#allocation3 + $0xb0] sm:$0xff]  ;;  %v1880_v45 = vld [vmem:[#allocation3 + $0xb8] sm:$0xff] }
  0x17   :  { %263 = vmatpush.msra.mxu1 %v1826_v27  ;;  %283 = vmatpush.msra.mxu2 %v1830_v28  ;;  %2807 = vst [vmem:[#allocation7_spill] sm:$0xff] %v1868_v41  ;;  %v106_v46 = vld [vmem:[%s2668_s0] sm:$0x3]  ;;  %v1891_v48 = vld [vmem:[#allocation3 + $0x88] sm:$0xff]  ;;  %v1893_v49 = vld [vmem:[#allocation3 + $0x90] sm:$0xff] }
  0x18   :  { %303 = vmatpush.msra.mxu3 %v1832_v29  ;;  %244 = vmatpush.msra.mxu0 %v1836_v30  ;;  %2808 = vst [vmem:[#allocation8_spill] sm:$0xff] %v1872_v42  ;;  %v1887_v47 = vld [vmem:[#allocation3 + $0x80] sm:$0xff]  ;;  %v1895_v50 = vld [vmem:[#allocation3 + $0x98] sm:$0xff]  ;;  %v1902_v52 = vld [vmem:[#allocation3 + $0x68] sm:$0xff] }
  0x19   :  { %264 = vmatpush.msra.mxu1 %v1838_v31  ;;  %284 = vmatpush.msra.mxu2 %v1842_v32  ;;  %2809 = vst [vmem:[#allocation9_spill] sm:$0xff] %v1874_v43  ;;  %v1899_v51 = vld [vmem:[#allocation3 + $0x60] sm:$0xff]  ;;  %v1904_v53 = vld [vmem:[#allocation3 + $0x70] sm:$0xff]  ;;  %v1908_v54 = vld [vmem:[#allocation3 + $0x78] sm:$0xff] }
  0x1a   :  { %304 = vmatpush.msra.mxu3 %v1844_v33  ;;  %245 = vmatpush.msra.mxu0 %v1848_v34  ;;  %2810 = vst [vmem:[#allocation10_spill] sm:$0xff] %v1878_v44  ;;  %v1910_v55 = vld [vmem:[#allocation3 + $0x40] sm:$0xff]  ;;  %v1914_v56 = vld [vmem:[#allocation3 + $0x48] sm:$0xff]  ;;  %v1916_v57 = vld [vmem:[#allocation3 + $0x50] sm:$0xff] }
  0x1b   :  { %265 = vmatpush.msra.mxu1 %v1850_v35  ;;  %285 = vmatpush.msra.mxu2 %v1854_v36  ;;  %2811 = vst [vmem:[#allocation11_spill] sm:$0xff] %v1880_v45  ;;  %v1920_v58 = vld [vmem:[#allocation3 + $0x58] sm:$0xff]  ;;  %v1922_v59 = vld [vmem:[#allocation3 + $0x20] sm:$0xff]  ;;  %v1926_v60 = vld [vmem:[#allocation3 + $0x28] sm:$0xff] }
  0x1c   :  { %305 = vmatpush.msra.mxu3 %v1856_v37  ;;  %246 = vmatpush.msra.mxu0 %v1860_v38  ;;  %2812 = vst [vmem:[#allocation12_spill] sm:$0xff] %v1887_v47  ;;  %v1928_v61 = vld [vmem:[#allocation3 + $0x30] sm:$0xff]  ;;  %v1932_v62 = vld [vmem:[#allocation3 + $0x38] sm:$0xff]  ;;  %v107_v63 = vld [vmem:[%s2668_s0 + $0x2] sm:$0x3] }
  0x1d   :  { %266 = vmatpush.msra.mxu1 %v1862_v39  ;;  %286 = vmatpush.msra.mxu2 %v1866_v40  ;;  %2813 = vst [vmem:[#allocation13_spill] sm:$0xff] %v1891_v48  ;;  %v1939_v0 = vld [vmem:[#allocation3] sm:$0xff]  ;;  %v1941_v1 = vld [vmem:[#allocation3 + $0x8] sm:$0xff] }
  0x1e   :  { %306 = vmatpush.msra.mxu3 %v1868_v41  ;;  %247 = vmatpush.msra.mxu0 %v1872_v42  ;;  %2814 = vst [vmem:[#allocation14_spill] sm:$0xff] %v1893_v49 }
  0x1f   :  { %267 = vmatpush.msra.mxu1 %v1874_v43  ;;  %2815 = vst [vmem:[#allocation15_spill] sm:$0xff] %v1895_v50  ;;  %287 = vmatpush.msra.mxu2 %v1878_v44 }
  0x20   :  { %307 = vmatpush.msra.mxu3 %v1880_v45  ;;  %2816 = vst [vmem:[#allocation16_spill] sm:$0xff] %v1899_v51  ;;  %117 = vperm.xlu0 %1483, %v106_v46   ;;  %v1945_v46 = vld [vmem:[#allocation3 + $0x10] sm:$0xff] }
  0x21   :  { %248 = vmatpush.msra.mxu0 %v1887_v47  ;;  %2817 = vst [vmem:[#allocation17_spill] sm:$0xff] %v1902_v52  ;;  %268 = vmatpush.msra.mxu1 %v1891_v48 }
  0x22   :  { %2818 = vst [vmem:[#allocation18_spill] sm:$0xff] %v1904_v53  ;;  %288 = vmatpush.msra.mxu2 %v1893_v49  ;;  %308 = vmatpush.msra.mxu3 %v1895_v50 }
  0x23   :  { %2819 = vst [vmem:[#allocation19_spill] sm:$0xff] %v1908_v54  ;;  %249 = vmatpush.msra.mxu0 %v1899_v51  ;;  %269 = vmatpush.msra.mxu1 %v1902_v52 }
  0x24   :  { %2820 = vst [vmem:[#allocation20_spill] sm:$0xff] %v1910_v55  ;;  %289 = vmatpush.msra.mxu2 %v1904_v53  ;;  %309 = vmatpush.msra.mxu3 %v1908_v54 }
  0x25   :  { %2821 = vst [vmem:[#allocation21_spill] sm:$0xff] %v1914_v56  ;;  %250 = vmatpush.msra.mxu0 %v1910_v55  ;;  %270 = vmatpush.msra.mxu1 %v1914_v56 }
  0x26   :  { %2822 = vst [vmem:[#allocation22_spill] sm:$0xff] %v1916_v57  ;;  %290 = vmatpush.msra.mxu2 %v1916_v57  ;;  %310 = vmatpush.msra.mxu3 %v1920_v58  ;;  %v1947_v57 = vld [vmem:[#allocation3 + $0x18] sm:$0xff] }
  0x27   :  { %2823 = vst [vmem:[#allocation23_spill] sm:$0xff] %v1920_v58  ;;  %251 = vmatpush.msra.mxu0 %v1922_v59  ;;  %271 = vmatpush.msra.mxu1 %v1926_v60 }
  0x28   :  { %2824 = vst [vmem:[#allocation24_spill] sm:$0xff] %v1922_v59  ;;  %291 = vmatpush.msra.mxu2 %v1928_v61  ;;  %311 = vmatpush.msra.mxu3 %v1932_v62  ;;  %v1714_v59 = vmov 0.0  }
  0x29   :  { %2825 = vst [vmem:[#allocation25_spill] sm:$0xff] %v1926_v60  ;;  %122 = vperm.xlu0 %1483, %v107_v63   ;;  %252 = vmatpush.msra.mxu0 %v1939_v0 }
  0x2a   :  { %2826 = vst [vmem:[#allocation26_spill] sm:$0xff] %v1928_v61  ;;  %272 = vmatpush.msra.mxu1 %v1941_v1  ;;  %292 = vmatpush.msra.mxu2 %v1945_v46  ;;  %v112_v61 = vld [vmem:[%s2668_s0 + $0xc] sm:$0x3] }
  0x2b   :  { %2827 = vst [vmem:[#allocation27_spill] sm:$0xff] %v1932_v62  ;;  %312 = vmatpush.msra.mxu3 %v1947_v57  ;;  %253 = vmatmul.f32.vlgmr.msra.gmra.mxu0 %v1714_v59 }
  0x2c   :  { %2828 = vst [vmem:[#allocation28_spill] sm:$0xff] %v1939_v0  ;;  %273 = vmatmul.f32.vlgmr.msra.gmra.mxu1 %v1714_v59  ;;  %293 = vmatmul.f32.vlgmr.msra.gmra.mxu2 %v1714_v59 }
  0x2d   :  { %2829 = vst [vmem:[#allocation29_spill] sm:$0xff] %v1941_v1  ;;  %313 = vmatmul.f32.vlgmr.msra.gmra.mxu3 %v1714_v59  ;;  %384 = vmatpush.msrb.mxu0 %v1756_v2  ;;  %v2832_v59 = vld [vmem:[#allocation22_spill] sm:$0xff] }
  0x2e   :  { %2830 = vst [vmem:[#allocation30_spill] sm:$0xff] %v1945_v46  ;;  %404 = vmatpush.msrb.mxu1 %v1758_v3  ;;  %424 = vmatpush.msrb.mxu2 %v1760_v4 }
  0x2f   :  { %2831 = vst [vmem:[#allocation31_spill] sm:$0xff] %v1947_v57  ;;  %444 = vmatpush.msrb.mxu3 %v1764_v5  ;;  %385 = vmatpush.msrb.mxu0 %v1766_v6 }
  0x30   :  { %405 = vmatpush.msrb.mxu1 %v1768_v7  ;;  %425 = vmatpush.msrb.mxu2 %v1772_v8 }
  0x31   :  { %147 = vperm.xlu0 %1483, %v112_v61   ;;  %445 = vmatpush.msrb.mxu3 %v1774_v9  ;;  %v2833_v61 = vld [vmem:[#allocation24_spill] sm:$0xff]  ;;  %v2834_v63 = vld [vmem:[#allocation26_spill] sm:$0xff] }
  0x32   :  { %386 = vmatpush.msrb.mxu0 %v1776_v10  ;;  %406 = vmatpush.msrb.mxu1 %v1780_v11 }
  0x33   :  { %426 = vmatpush.msrb.mxu2 %v1782_v12  ;;  %446 = vmatpush.msrb.mxu3 %v1784_v13 }
  0x34   :  { %387 = vmatpush.msrb.mxu0 %v1788_v14  ;;  %407 = vmatpush.msrb.mxu1 %v1790_v15 }
  0x35   :  { %427 = vmatpush.msrb.mxu2 %v1794_v16  ;;  %447 = vmatpush.msrb.mxu3 %v1796_v17 }
  0x36   :  { %388 = vmatpush.msrb.mxu0 %v1800_v18  ;;  %408 = vmatpush.msrb.mxu1 %v1802_v19 }
  0x37   :  { %428 = vmatpush.msrb.mxu2 %v1806_v20  ;;  %448 = vmatpush.msrb.mxu3 %v1808_v21 }
  0x38   :  { %389 = vmatpush.msrb.mxu0 %v1812_v22  ;;  %409 = vmatpush.msrb.mxu1 %v1814_v23 }
  0x39   :  { %429 = vmatpush.msrb.mxu2 %v1818_v24  ;;  %449 = vmatpush.msrb.mxu3 %v1820_v25 }
  0x3a   :  { %390 = vmatpush.msrb.mxu0 %v1824_v26  ;;  %410 = vmatpush.msrb.mxu1 %v1826_v27 }
  0x3b   :  { %430 = vmatpush.msrb.mxu2 %v1830_v28  ;;  %450 = vmatpush.msrb.mxu3 %v1832_v29 }
  0x3c   :  { %391 = vmatpush.msrb.mxu0 %v1836_v30  ;;  %411 = vmatpush.msrb.mxu1 %v1838_v31 }
  0x3d   :  { %431 = vmatpush.msrb.mxu2 %v1842_v32  ;;  %451 = vmatpush.msrb.mxu3 %v1844_v33 }
  0x3e   :  { %392 = vmatpush.msrb.mxu0 %v1848_v34  ;;  %412 = vmatpush.msrb.mxu1 %v1850_v35 }
  0x3f   :  { %432 = vmatpush.msrb.mxu2 %v1854_v36  ;;  %452 = vmatpush.msrb.mxu3 %v1856_v37 }
  0x40   :  { %393 = vmatpush.msrb.mxu0 %v1860_v38  ;;  %413 = vmatpush.msrb.mxu1 %v1862_v39 }
  0x41   :  { %433 = vmatpush.msrb.mxu2 %v1866_v40  ;;  %453 = vmatpush.msrb.mxu3 %v1868_v41 }
  0x42   :  { %394 = vmatpush.msrb.mxu0 %v1872_v42  ;;  %414 = vmatpush.msrb.mxu1 %v1874_v43 }
  0x43   :  { %434 = vmatpush.msrb.mxu2 %v1878_v44  ;;  %454 = vmatpush.msrb.mxu3 %v1880_v45 }
  0x44   :  { %395 = vmatpush.msrb.mxu0 %v1887_v47  ;;  %415 = vmatpush.msrb.mxu1 %v1891_v48 }
  0x45   :  { %435 = vmatpush.msrb.mxu2 %v1893_v49  ;;  %455 = vmatpush.msrb.mxu3 %v1895_v50 }
  0x46   :  { %396 = vmatpush.msrb.mxu0 %v1899_v51  ;;  %416 = vmatpush.msrb.mxu1 %v1902_v52 }
  0x47   :  { %436 = vmatpush.msrb.mxu2 %v1904_v53  ;;  %456 = vmatpush.msrb.mxu3 %v1908_v54 }
  0x48   :  { %397 = vmatpush.msrb.mxu0 %v1910_v55  ;;  %417 = vmatpush.msrb.mxu1 %v1914_v56 }
  0x49   :  { %437 = vmatpush.msrb.mxu2 %v2832_v59  ;;  %457 = vmatpush.msrb.mxu3 %v1920_v58 }
  0x4a   :  { %398 = vmatpush.msrb.mxu0 %v2833_v61  ;;  %418 = vmatpush.msrb.mxu1 %v1926_v60 }
  0x4b   :  { %438 = vmatpush.msrb.mxu2 %v2834_v63  ;;  %458 = vmatpush.msrb.mxu3 %v1932_v62 }
  0x4c   :  { %399 = vmatpush.msrb.mxu0 %v1939_v0  ;;  %419 = vmatpush.msrb.mxu1 %v1941_v1 }
  0x4d   :  { %439 = vmatpush.msrb.mxu2 %v1945_v46  ;;  %459 = vmatpush.msrb.mxu3 %v1947_v57 }
  0x4e   :  { %531 = vmatpush.msra.mxu0 %v1756_v2  ;;  %551 = vmatpush.msra.mxu1 %v1758_v3 }
  0x4f   :  { %571 = vmatpush.msra.mxu2 %v1760_v4  ;;  %591 = vmatpush.msra.mxu3 %v1764_v5 }
  0x50   :  { %532 = vmatpush.msra.mxu0 %v1766_v6  ;;  %552 = vmatpush.msra.mxu1 %v1768_v7 }
  0x51   :  { %572 = vmatpush.msra.mxu2 %v1772_v8  ;;  %592 = vmatpush.msra.mxu3 %v1774_v9 }
  0x52   :  { %533 = vmatpush.msra.mxu0 %v1776_v10  ;;  %553 = vmatpush.msra.mxu1 %v1780_v11 }
  0x53   :  { %573 = vmatpush.msra.mxu2 %v1782_v12  ;;  %593 = vmatpush.msra.mxu3 %v1784_v13 }
  0x54   :  { %534 = vmatpush.msra.mxu0 %v1788_v14  ;;  %554 = vmatpush.msra.mxu1 %v1790_v15 }
  0x55   :  { %574 = vmatpush.msra.mxu2 %v1794_v16  ;;  %594 = vmatpush.msra.mxu3 %v1796_v17 }
  0x56   :  { %535 = vmatpush.msra.mxu0 %v1800_v18  ;;  %555 = vmatpush.msra.mxu1 %v1802_v19 }
  0x57   :  { %575 = vmatpush.msra.mxu2 %v1806_v20  ;;  %595 = vmatpush.msra.mxu3 %v1808_v21 }
  0x58   :  { %536 = vmatpush.msra.mxu0 %v1812_v22  ;;  %556 = vmatpush.msra.mxu1 %v1814_v23 }
  0x59   :  { %576 = vmatpush.msra.mxu2 %v1818_v24  ;;  %596 = vmatpush.msra.mxu3 %v1820_v25 }
  0x5a   :  { %537 = vmatpush.msra.mxu0 %v1824_v26  ;;  %557 = vmatpush.msra.mxu1 %v1826_v27 }
  0x5b   :  { %577 = vmatpush.msra.mxu2 %v1830_v28  ;;  %597 = vmatpush.msra.mxu3 %v1832_v29 }
  0x5c   :  { %538 = vmatpush.msra.mxu0 %v1836_v30  ;;  %558 = vmatpush.msra.mxu1 %v1838_v31 }
  0x5d   :  { %578 = vmatpush.msra.mxu2 %v1842_v32  ;;  %598 = vmatpush.msra.mxu3 %v1844_v33 }
  0x5e   :  { %539 = vmatpush.msra.mxu0 %v1848_v34  ;;  %559 = vmatpush.msra.mxu1 %v1850_v35 }
  0x5f   :  { %579 = vmatpush.msra.mxu2 %v1854_v36  ;;  %599 = vmatpush.msra.mxu3 %v1856_v37 }
  0x60   :  { %540 = vmatpush.msra.mxu0 %v1860_v38  ;;  %560 = vmatpush.msra.mxu1 %v1862_v39 }
  0x61   :  { %580 = vmatpush.msra.mxu2 %v1866_v40  ;;  %600 = vmatpush.msra.mxu3 %v1868_v41 }
  0x62   :  { %541 = vmatpush.msra.mxu0 %v1872_v42  ;;  %561 = vmatpush.msra.mxu1 %v1874_v43 }
  0x63   :  { %581 = vmatpush.msra.mxu2 %v1878_v44  ;;  %601 = vmatpush.msra.mxu3 %v1880_v45 }
  0x64   :  { %542 = vmatpush.msra.mxu0 %v1887_v47  ;;  %562 = vmatpush.msra.mxu1 %v1891_v48 }
  0x65   :  { %582 = vmatpush.msra.mxu2 %v1893_v49  ;;  %602 = vmatpush.msra.mxu3 %v1895_v50 }
  0x66   :  { %543 = vmatpush.msra.mxu0 %v1899_v51  ;;  %563 = vmatpush.msra.mxu1 %v1902_v52 }
  0x67   :  { %583 = vmatpush.msra.mxu2 %v1904_v53  ;;  %603 = vmatpush.msra.mxu3 %v1908_v54 }
  0x68   :  { %544 = vmatpush.msra.mxu0 %v1910_v55  ;;  %564 = vmatpush.msra.mxu1 %v1914_v56 }
  0x69   :  { %584 = vmatpush.msra.mxu2 %v2832_v59  ;;  %604 = vmatpush.msra.mxu3 %v1920_v58  ;;  %v114_v58 = vld [vmem:[%s2669_s1] sm:$0xf] }
  0x6a   :  { %545 = vmatpush.msra.mxu0 %v2833_v61  ;;  %565 = vmatpush.msra.mxu1 %v1926_v60  ;;  %v2088_v59 = vperm.slane %v114_v58, 0  ;;  %v2090_v61 = vperm.slane %v114_v58, 1  ;;  %v2103_v55 = vperm.slane %v114_v58, 2 }
  0x6b   :  { %585 = vmatpush.msra.mxu2 %v2834_v63  ;;  %605 = vmatpush.msra.mxu3 %v1932_v62  ;;  %v105_v62 = vld [vmem:[%s2671_s3] sm:$0xf] }
  0x6c   :  { %546 = vmatpush.msra.mxu0 %v1939_v0  ;;  %566 = vmatpush.msra.mxu1 %v1941_v1  ;;  %2835 = vst [vmem:[#allocation32_spill] sm:$0xff] %v2088_v59  ;;  %v2096_v1 = vperm.slane %v105_v62, 0  ;;  %v2106_v49 = vperm.slane %v105_v62, 2 }
  0x6d   :  { %586 = vmatpush.msra.mxu2 %v1945_v46  ;;  %606 = vmatpush.msra.mxu3 %v1947_v57  ;;  %2836 = vst [vmem:[#allocation33_spill] sm:$0xff] %v2090_v61  ;;  %v2099_v57 = vperm.slane %v105_v62, 1 }
  0x6e   :  { %2837 = vst [vmem:[#allocation34_spill] sm:$0xff] %v2096_v1 }
  0x6f   :  { %2838 = vst [vmem:[#allocation35_spill] sm:$0xff] %v2099_v57 }
  0x70   :  { %2839 = vst [vmem:[#allocation36_spill] sm:$0xff] %v2103_v55 }
  0x71   :  { %2840 = vst [vmem:[#allocation37_spill] sm:$0xff] %v2106_v49 }
  0x92   :  { %v118_v63 = vpop.permute.xlu0 %117 }
  0x93   :  { %v164_v0 = vmul.f32 %v2088_v59, %v118_v63  ;;  %v165_v46 = vmul.f32 %v2090_v61, %v118_v63  ;;  %v166_v50 = vmul.f32 %v2103_v55, %v118_v63 }
  0x95   :  { %v205_v60 = vadd.f32 %v2096_v1, %v164_v0  ;;  %v206_v56 = vadd.f32 %v2099_v57, %v165_v46  ;;  %v207_v61 = vadd.f32 %v2106_v49, %v166_v50  ;;  %v2109_v1 = vperm.slane %v114_v58, 3 }
  0x97   :  { %2841 = vst [vmem:[#allocation38_spill] sm:$0xff] %v2109_v1 }
  0xa8   :  { %v254_v54 = vpop.f32.mrf.mxu0 }
  0xa9   :  { %v274_v53 = vpop.f32.mrf.mxu1  ;;  %v317_v52 = vadd.f32 %v254_v54, %v205_v60  ;;  %v167_v54 = vmul.f32 %v2109_v1, %v118_v63 }
  0xaa   :  { %v318_v51 = vadd.f32 %v274_v53, %v206_v56  ;;  %v2112_v56 = vperm.slane %v105_v62, 3 }
  0xab   :  { %v1453_v59 = vmul.f32 -1.442695, %v317_v52 }
  0xac   :  { %v1454_v48 = vmul.f32 -1.442695, %v318_v51  ;;  %2842 = vst [vmem:[#allocation39_spill] sm:$0xff] %v2112_v56  ;;  %v208_v50 = vadd.f32 %v2112_v56, %v167_v54 }
  0xad   :  { %1488 = vpow2.f32 %v1453_v59 }
  0xae   :  { %1490 = vpow2.f32 %v1454_v48 }
  0xaf   :  { %v294_v47 = vpop.f32.mrf.mxu2 }
  0xb0   :  { %v319_v0 = vadd.f32 %v294_v47, %v207_v61  ;;  %v314_v51 = vpop.f32.mrf.mxu3 }
  0xb1   :  { %v320_v58 = vadd.f32 %v314_v51, %v208_v50 }
  0xb2   :  { %v1455_v46 = vmul.f32 -1.442695, %v319_v0 }
  0xb3   :  { %v1489_v57 = vpop.eup %1488 }
  0xb4   :  { %v1491_v45 = vpop.eup %1490  ;;  %v330_v44 = vadd.f32 1.0, %v1489_v57  ;;  %1492 = vpow2.f32 %v1455_v46 }
  0xb5   :  { %v331_v53 = vadd.f32 1.0, %v1491_v45 }
  0xb6   :  { %1494 = vrcp.f32 %v330_v44  ;;  %v344_v45 = vand.u32 2147483648, %v330_v44  ;;  %v342_v62 = vand.u32 2147483647, %v330_v44  ;;  %vm338_vm2 = vweird.f32 %v330_v44 }
  0xb7   :  { %1496 = vrcp.f32 %v331_v53  ;;  %v359_v46 = vand.u32 2147483648, %v331_v53  ;;  %v357_v49 = vand.u32 2147483647, %v331_v53  ;;  %vm353_vm3 = vweird.f32 %v331_v53 }
  0xb8   :  { %vm343_vm5 = vcmp.eq.f32.partialorder %v342_v62, 8.507059e+37  ;;  %v2864_v62 = vld [vmem:[#allocation27_spill] sm:$0xff] }
  0xb9   :  { %v360_v56 = vor.u32 1.1754944e-38, %v359_v46  ;;  %vm358_vm7 = vcmp.eq.f32.partialorder %v357_v49, 8.507059e+37 }
  0xba   :  { %v1493_v48 = vpop.eup %1492 }
  0xbb   :  { %v332_v52 = vadd.f32 1.0, %v1493_v48  ;;  %v345_v48 = vor.u32 1.1754944e-38, %v344_v45 }
  0xbc   :  { %v1495_v47 = vpop.eup %1494 }
  0xbd   :  { %v1497_v60 = vpop.eup %1496  ;;  %v334_v59 = vmul.f32 %v1495_v47, %v330_v44  ;;  %1498 = vrcp.f32 %v332_v52  ;;  %vm339_vm0 = vweird.f32 %v1495_v47  ;;  %vm368_vm9 = vweird.f32 %v332_v52 }
  0xbe   :  { %v349_v61 = vmul.f32 %v1497_v60, %v331_v53  ;;  %1500 = vtanh.f32 %v320_v58  ;;  %vm354_vm1 = vweird.f32 %v1497_v60  ;;  %vm340_vm4 = vmor %vm338_vm2, %vm339_vm0  ;;  %v372_v53 = vand.u32 2147483647, %v332_v52 }
  0xbf   :  { %v335_v57 = vsub.f32 1.0, %v334_v59  ;;  %vm355_vm6 = vmor %vm353_vm3, %vm354_vm1 }
  0xc0   :  { %v350_v0 = vsub.f32 1.0, %v349_v61  ;;  %vm373_vm11 = vcmp.eq.f32.partialorder %v372_v53, 8.507059e+37  ;;  %v2872_v53 = vld [vmem:[#allocation35_spill] sm:$0xff] }
  0xc1   :  { %v336_v63 = vmul.f32 %v1495_v47, %v335_v57 }
  0xc2   :  { %v351_v1 = vmul.f32 %v1497_v60, %v350_v0 }
  0xc3   :  { %v1499_v55 = vpop.eup %1498  ;;  %v337_v54 = vadd.f32 %v1495_v47, %v336_v63 }
  0xc4   :  { %v364_v51 = vmul.f32 %v1499_v55, %v332_v52  ;;  %v352_v50 = vadd.f32 %v1497_v60, %v351_v1  ;;  %v1501_v58 = vpop.eup %1500  ;;  %vm369_vm8 = vweird.f32 %v1499_v55  ;;  %v374_v1 = vand.u32 2147483648, %v332_v52  ;;  %v2863_v52 = vld [vmem:[#allocation26_spill] sm:$0xff] }
  0xc5   :  { %v341_v59 = vsel %vm340_vm4, %v1495_v47, %v337_v54  ;;  %vm370_vm10 = vmor %vm368_vm9, %vm369_vm8  ;;  %v2865_v54 = vld [vmem:[#allocation28_spill] sm:$0xff] }
  0xc6   :  { %v365_v61 = vsub.f32 1.0, %v364_v51  ;;  %v346_v57 = vsel %vm343_vm5, %v345_v48, %v341_v59  ;;  %v356_v43 = vsel %vm355_vm6, %v1497_v60, %v352_v50  ;;  %v375_v45 = vor.u32 1.1754944e-38, %v374_v1  ;;  %v2866_v51 = vld [vmem:[#allocation29_spill] sm:$0xff]  ;;  %v2867_v48 = vld [vmem:[#allocation30_spill] sm:$0xff]  ;;  %v2868_v50 = vld [vmem:[#allocation31_spill] sm:$0xff]  ;;  %v123_v59 = vpop.permute.xlu0 %122 }
  0xc7   :  { %v361_v0 = vsel %vm358_vm7, %v360_v56, %v356_v43  ;;  %v380_v42 = vmul.f32 %v1501_v58, %v346_v57  ;;  %v2860_v43 = vld [vmem:[#allocation23_spill] sm:$0xff]  ;;  %v2862_v56 = vld [vmem:[#allocation25_spill] sm:$0xff]  ;;  %v2869_v58 = vld [vmem:[#allocation32_spill] sm:$0xff] }
  0xc8   :  { %v379_v41 = vmul.f32 0.0, %v361_v0  ;;  %v366_v40 = vmul.f32 %v1499_v55, %v365_v61  ;;  %v168_v61 = vmul.f32 %v2869_v58, %v123_v59  ;;  %v2870_v57 = vld [vmem:[#allocation33_spill] sm:$0xff] }
  0xc9   :  { %v169_v0 = vmul.f32 %v2870_v57, %v123_v59  ;;  %v2874_v57 = vld [vmem:[#allocation37_spill] sm:$0xff] }
  0xca   :  { %v2115_v63 = vadd.f32 %v380_v42, %v379_v41  ;;  %v367_v44 = vadd.f32 %v1499_v55, %v366_v40  ;;  %v2857_v40 = vld [vmem:[#allocation20_spill] sm:$0xff]  ;;  %v2858_v41 = vld [vmem:[#allocation21_spill] sm:$0xff]  ;;  %v2859_v42 = vld [vmem:[#allocation22_spill] sm:$0xff] }
  0xcc   :  { %1502 = vtanh.f32 %v2115_v63  ;;  %v371_v47 = vsel %vm370_vm10, %v1499_v55, %v367_v44  ;;  %v2861_v55 = vld [vmem:[#allocation24_spill] sm:$0xff]  ;;  %v2871_v44 = vld [vmem:[#allocation34_spill] sm:$0xff] }
  0xcd   :  { %v376_v60 = vsel %vm373_vm11, %v375_v45, %v371_v47  ;;  %v209_v1 = vadd.f32 %v2871_v44, %v168_v61  ;;  %v210_v47 = vadd.f32 %v2872_v53, %v169_v0  ;;  %v109_v0 = vld [vmem:[%s2668_s0 + $0x6] sm:$0x3] }
  0xd2   :  { %v1503_v46 = vpop.eup %1502 }
  0xd3   :  { %v383_v49 = vmul.f32 %v1503_v46, %v376_v60 }
  0xd5   :  { %400 = vmatmul.f32.vlgmr.msrb.gmra.mxu0 %v383_v49  ;;  %420 = vmatmul.f32.vlgmr.msrb.gmra.mxu1 %v383_v49 }
  0xd6   :  { %440 = vmatmul.f32.vlgmr.msrb.gmra.mxu2 %v383_v49  ;;  %460 = vmatmul.f32.vlgmr.msrb.gmra.mxu3 %v383_v49 }
  0xd7   :  { %678 = vmatpush.msrb.mxu0 %v1756_v2  ;;  %698 = vmatpush.msrb.mxu1 %v1758_v3  ;;  %v2843_v2 = vld [vmem:[#allocation6_spill] sm:$0xff]  ;;  %v2844_v3 = vld [vmem:[#allocation7_spill] sm:$0xff] }
  0xd8   :  { %718 = vmatpush.msrb.mxu2 %v1760_v4  ;;  %738 = vmatpush.msrb.mxu3 %v1764_v5  ;;  %v2845_v4 = vld [vmem:[#allocation8_spill] sm:$0xff]  ;;  %v2846_v5 = vld [vmem:[#allocation9_spill] sm:$0xff] }
  0xd9   :  { %679 = vmatpush.msrb.mxu0 %v1766_v6  ;;  %699 = vmatpush.msrb.mxu1 %v1768_v7  ;;  %v2847_v6 = vld [vmem:[#allocation10_spill] sm:$0xff]  ;;  %v2848_v7 = vld [vmem:[#allocation11_spill] sm:$0xff] }
  0xda   :  { %719 = vmatpush.msrb.mxu2 %v1772_v8  ;;  %739 = vmatpush.msrb.mxu3 %v1774_v9  ;;  %v2849_v8 = vld [vmem:[#allocation12_spill] sm:$0xff]  ;;  %v2850_v9 = vld [vmem:[#allocation13_spill] sm:$0xff] }
  0xdb   :  { %680 = vmatpush.msrb.mxu0 %v1776_v10  ;;  %700 = vmatpush.msrb.mxu1 %v1780_v11  ;;  %v2851_v10 = vld [vmem:[#allocation14_spill] sm:$0xff]  ;;  %v2852_v11 = vld [vmem:[#allocation15_spill] sm:$0xff] }
  0xdc   :  { %720 = vmatpush.msrb.mxu2 %v1782_v12  ;;  %740 = vmatpush.msrb.mxu3 %v1784_v13  ;;  %v2853_v12 = vld [vmem:[#allocation16_spill] sm:$0xff]  ;;  %v2854_v13 = vld [vmem:[#allocation17_spill] sm:$0xff] }
  0xdd   :  { %681 = vmatpush.msrb.mxu0 %v1788_v14  ;;  %701 = vmatpush.msrb.mxu1 %v1790_v15  ;;  %v2855_v14 = vld [vmem:[#allocation18_spill] sm:$0xff]  ;;  %v2856_v15 = vld [vmem:[#allocation19_spill] sm:$0xff] }
  0xde   :  { %721 = vmatpush.msrb.mxu2 %v1794_v16  ;;  %741 = vmatpush.msrb.mxu3 %v1796_v17 }
  0xdf   :  { %682 = vmatpush.msrb.mxu0 %v1800_v18  ;;  %702 = vmatpush.msrb.mxu1 %v1802_v19 }
  0xe0   :  { %722 = vmatpush.msrb.mxu2 %v1806_v20  ;;  %742 = vmatpush.msrb.mxu3 %v1808_v21 }
  0xe1   :  { %683 = vmatpush.msrb.mxu0 %v1812_v22  ;;  %703 = vmatpush.msrb.mxu1 %v1814_v23 }
  0xe2   :  { %723 = vmatpush.msrb.mxu2 %v1818_v24  ;;  %743 = vmatpush.msrb.mxu3 %v1820_v25 }
  0xe3   :  { %684 = vmatpush.msrb.mxu0 %v1824_v26  ;;  %704 = vmatpush.msrb.mxu1 %v1826_v27 }
  0xe4   :  { %724 = vmatpush.msrb.mxu2 %v1830_v28  ;;  %744 = vmatpush.msrb.mxu3 %v1832_v29 }
  0xe5   :  { %685 = vmatpush.msrb.mxu0 %v1836_v30  ;;  %705 = vmatpush.msrb.mxu1 %v1838_v31 }
  0xe6   :  { %725 = vmatpush.msrb.mxu2 %v1842_v32  ;;  %745 = vmatpush.msrb.mxu3 %v1844_v33 }
  0xe7   :  { %686 = vmatpush.msrb.mxu0 %v1848_v34  ;;  %706 = vmatpush.msrb.mxu1 %v1850_v35 }
  0xe8   :  { %726 = vmatpush.msrb.mxu2 %v1854_v36  ;;  %746 = vmatpush.msrb.mxu3 %v1856_v37 }
  0xe9   :  { %687 = vmatpush.msrb.mxu0 %v1860_v38  ;;  %707 = vmatpush.msrb.mxu1 %v1862_v39 }
  0xea   :  { %727 = vmatpush.msrb.mxu2 %v2843_v2  ;;  %747 = vmatpush.msrb.mxu3 %v2844_v3 }
  0xeb   :  { %688 = vmatpush.msrb.mxu0 %v2845_v4  ;;  %708 = vmatpush.msrb.mxu1 %v2846_v5 }
  0xec   :  { %728 = vmatpush.msrb.mxu2 %v2847_v6  ;;  %748 = vmatpush.msrb.mxu3 %v2848_v7 }
  0xed   :  { %689 = vmatpush.msrb.mxu0 %v2849_v8  ;;  %709 = vmatpush.msrb.mxu1 %v2850_v9 }
  0xee   :  { %729 = vmatpush.msrb.mxu2 %v2851_v10  ;;  %749 = vmatpush.msrb.mxu3 %v2852_v11 }
  0xef   :  { %690 = vmatpush.msrb.mxu0 %v2853_v12  ;;  %710 = vmatpush.msrb.mxu1 %v2854_v13 }
  0xf0   :  { %730 = vmatpush.msrb.mxu2 %v2855_v14  ;;  %750 = vmatpush.msrb.mxu3 %v2856_v15 }
  0xf1   :  { %691 = vmatpush.msrb.mxu0 %v2857_v40  ;;  %711 = vmatpush.msrb.mxu1 %v2858_v41 }
  0xf2   :  { %731 = vmatpush.msrb.mxu2 %v2859_v42  ;;  %751 = vmatpush.msrb.mxu3 %v2860_v43 }
  0xf3   :  { %692 = vmatpush.msrb.mxu0 %v2861_v55  ;;  %712 = vmatpush.msrb.mxu1 %v2862_v56 }
  0xf4   :  { %732 = vmatpush.msrb.mxu2 %v2863_v52  ;;  %752 = vmatpush.msrb.mxu3 %v2864_v62 }
  0xf5   :  { %693 = vmatpush.msrb.mxu0 %v2865_v54  ;;  %713 = vmatpush.msrb.mxu1 %v2866_v51  ;;  %v2873_v54 = vld [vmem:[#allocation36_spill] sm:$0xff] }
  0xf6   :  { %733 = vmatpush.msrb.mxu2 %v2867_v48  ;;  %753 = vmatpush.msrb.mxu3 %v2868_v50  ;;  %v170_v62 = vmul.f32 %v2873_v54, %v123_v59  ;;  %v108_v50 = vld [vmem:[%s2668_s0 + $0x4] sm:$0x3] }
  0xf7   :  { %127 = vperm.xlu1 %1484, %v108_v50  }
  0xf8   :  { %v211_v58 = vadd.f32 %v2874_v57, %v170_v62  ;;  %v113_v62 = vld [vmem:[%s2668_s0 + $0xe] sm:$0x3] }
  0xff   :  { %132 = vperm.xlu1 %1484, %v109_v0  }
 0x107   :  { %152 = vperm.xlu1 %1484, %v113_v62  }
 0x152   :  { %v401_v45 = vpop.f32.mrf.mxu0  ;;  %v421_v46 = vpop.f32.mrf.mxu1 }
 0x153   :  { %v464_v60 = vadd.f32 %v401_v45, %v209_v1  ;;  %v465_v49 = vadd.f32 %v421_v46, %v210_v47 }
 0x155   :  { %v1456_v51 = vmul.f32 -1.442695, %v464_v60  ;;  %v1457_v52 = vmul.f32 -1.442695, %v465_v49  ;;  %v2875_v49 = vld [vmem:[#allocation38_spill] sm:$0xff] }
 0x156   :  { %v171_v50 = vmul.f32 %v2875_v49, %v123_v59 }
 0x157   :  { %1504 = vpow2.f32 %v1456_v51 }
 0x158   :  { %1506 = vpow2.f32 %v1457_v52 }
 0x159   :  { %v441_v61 = vpop.f32.mrf.mxu2  ;;  %v461_v52 = vpop.f32.mrf.mxu3 }
 0x15a   :  { %v466_v44 = vadd.f32 %v441_v61, %v211_v58  ;;  %v2876_v58 = vld [vmem:[#allocation39_spill] sm:$0xff] }
 0x15b   :  { %v212_v61 = vadd.f32 %v2876_v58, %v171_v50 }
 0x15c   :  { %v1458_v1 = vmul.f32 -1.442695, %v466_v44 }
 0x15d   :  { %v1505_v47 = vpop.eup %1504  ;;  %v467_v54 = vadd.f32 %v461_v52, %v212_v61 }
 0x15e   :  { %v1507_v45 = vpop.eup %1506  ;;  %v477_v46 = vadd.f32 1.0, %v1505_v47  ;;  %1508 = vpow2.f32 %v1458_v1 }
 0x15f   :  { %v478_v60 = vadd.f32 1.0, %v1507_v45 }
 0x160   :  { %1510 = vrcp.f32 %v477_v46  ;;  %v491_v59 = vand.u32 2147483648, %v477_v46  ;;  %v489_v56 = vand.u32 2147483647, %v477_v46  ;;  %vm485_vm14 = vweird.f32 %v477_v46 }
 0x161   :  { %1512 = vrcp.f32 %v478_v60  ;;  %v506_v49 = vand.u32 2147483648, %v478_v60  ;;  %v504_v43 = vand.u32 2147483647, %v478_v60  ;;  %vm500_vm15 = vweird.f32 %v478_v60 }
 0x162   :  { %v492_v62 = vor.u32 1.1754944e-38, %v491_v59  ;;  %vm490_vm2 = vcmp.eq.f32.partialorder %v489_v56, 8.507059e+37  ;;  %v2218_v59 = vld [vmem:[#allocation3 + $0x1c8] sm:$0xff] }
 0x163   :  { %vm505_vm3 = vcmp.eq.f32.partialorder %v504_v43, 8.507059e+37 }
 0x164   :  { %v1509_v51 = vpop.eup %1508 }
 0x165   :  { %v479_v57 = vadd.f32 1.0, %v1509_v51 }
 0x166   :  { %v1511_v44 = vpop.eup %1510 }
 0x167   :  { %v1513_v47 = vpop.eup %1512  ;;  %v481_v1 = vmul.f32 %v1511_v44, %v477_v46  ;;  %1514 = vrcp.f32 %v479_v57  ;;  %vm486_vm12 = vweird.f32 %v1511_v44  ;;  %vm515_vm5 = vweird.f32 %v479_v57 }
 0x168   :  { %v496_v0 = vmul.f32 %v1513_v47, %v478_v60  ;;  %1516 = vtanh.f32 %v467_v54  ;;  %vm501_vm13 = vweird.f32 %v1513_v47  ;;  %vm487_vm0 = vmor %vm485_vm14, %vm486_vm12 }
 0x169   :  { %v482_v45 = vsub.f32 1.0, %v481_v1  ;;  %vm502_vm1 = vmor %vm500_vm15, %vm501_vm13  ;;  %v507_v1 = vor.u32 1.1754944e-38, %v506_v49  ;;  %v519_v49 = vand.u32 2147483647, %v479_v57 }
 0x16a   :  { %v497_v53 = vsub.f32 1.0, %v496_v0 }
 0x16b   :  { %v483_v48 = vmul.f32 %v1511_v44, %v482_v45  ;;  %vm520_vm7 = vcmp.eq.f32.partialorder %v519_v49, 8.507059e+37 }
 0x16c   :  { %v498_v55 = vmul.f32 %v1513_v47, %v497_v53 }
 0x16d   :  { %v1515_v50 = vpop.eup %1514  ;;  %v484_v51 = vadd.f32 %v1511_v44, %v483_v48 }
 0x16e   :  { %v511_v52 = vmul.f32 %v1515_v50, %v479_v57  ;;  %v499_v61 = vadd.f32 %v1513_v47, %v498_v55  ;;  %v1517_v54 = vpop.eup %1516  ;;  %vm516_vm4 = vweird.f32 %v1515_v50  ;;  %v521_v55 = vand.u32 2147483648, %v479_v57  ;;  %v2212_v57 = vld [vmem:[#allocation3 + $0x1f8] sm:$0xff] }
 0x16f   :  { %v488_v0 = vsel %vm487_vm0, %v1511_v44, %v484_v51  ;;  %vm517_vm6 = vmor %vm515_vm5, %vm516_vm4  ;;  %v2224_v51 = vld [vmem:[#allocation3 + $0x1d8] sm:$0xff] }
 0x170   :  { %v512_v58 = vsub.f32 1.0, %v511_v52  ;;  %v493_v45 = vsel %vm490_vm2, %v492_v62, %v488_v0  ;;  %v503_v42 = vsel %vm502_vm1, %v1513_v47, %v499_v61  ;;  %v522_v44 = vor.u32 1.1754944e-38, %v521_v55  ;;  %v2227_v52 = vld [vmem:[#allocation3 + $0x1a0] sm:$0xff]  ;;  %v2230_v62 = vld [vmem:[#allocation3 + $0x1a8] sm:$0xff]  ;;  %v2233_v61 = vld [vmem:[#allocation3 + $0x1b0] sm:$0xff] }
 0x171   :  { %v508_v53 = vsel %vm505_vm3, %v507_v1, %v503_v42  ;;  %v527_v41 = vmul.f32 %v1517_v54, %v493_v45  ;;  %v2236_v1 = vld [vmem:[#allocation3 + $0x1b8] sm:$0xff]  ;;  %v2239_v0 = vld [vmem:[#allocation3 + $0x180] sm:$0xff]  ;;  %v2242_v54 = vld [vmem:[#allocation3 + $0x188] sm:$0xff] }
 0x172   :  { %v526_v40 = vmul.f32 %v508_v53, %v2115_v63  ;;  %v513_v48 = vmul.f32 %v1515_v50, %v512_v58  ;;  %v2203_v63 = vld [vmem:[#allocation3 + $0x1e0] sm:$0xff]  ;;  %v2896_v55 = vld [vmem:[#allocation39_spill] sm:$0xff] }
 0x173   :  { %v2215_v58 = vld [vmem:[#allocation3 + $0x1c0] sm:$0xff] }
 0x174   :  { %v2200_v46 = vadd.f32 %v527_v41, %v526_v40  ;;  %v514_v60 = vadd.f32 %v1515_v50, %v513_v48  ;;  %v2206_v40 = vld [vmem:[#allocation3 + $0x1e8] sm:$0xff]  ;;  %v2209_v41 = vld [vmem:[#allocation3 + $0x1f0] sm:$0xff]  ;;  %v2895_v45 = vld [vmem:[#allocation38_spill] sm:$0xff] }
 0x176   :  { %1518 = vtanh.f32 %v2200_v46  ;;  %v518_v56 = vsel %vm517_vm6, %v1515_v50, %v514_v60  ;;  %v2221_v50 = vld [vmem:[#allocation3 + $0x1d0] sm:$0xff] }
 0x177   :  { %v523_v43 = vsel %vm520_vm7, %v522_v44, %v518_v56 }
 0x17c   :  { %v1519_v47 = vpop.eup %1518 }
 0x17d   :  { %v530_v42 = vmul.f32 %v1519_v47, %v523_v43 }
 0x17f   :  { %547 = vmatmul.f32.vlgmr.msra.gmra.mxu0 %v530_v42  ;;  %567 = vmatmul.f32.vlgmr.msra.gmra.mxu1 %v530_v42 }
 0x180   :  { %587 = vmatmul.f32.vlgmr.msra.gmra.mxu2 %v530_v42  ;;  %607 = vmatmul.f32.vlgmr.msra.gmra.mxu3 %v530_v42 }
 0x181   :  { %825 = vmatpush.msra.mxu0 %v2203_v63  ;;  %845 = vmatpush.msra.mxu1 %v2206_v40 }
 0x182   :  { %865 = vmatpush.msra.mxu2 %v2209_v41  ;;  %885 = vmatpush.msra.mxu3 %v2212_v57 }
 0x183   :  { %826 = vmatpush.msra.mxu0 %v2215_v58  ;;  %846 = vmatpush.msra.mxu1 %v2218_v59 }
 0x184   :  { %866 = vmatpush.msra.mxu2 %v2221_v50  ;;  %886 = vmatpush.msra.mxu3 %v2224_v51 }
 0x185   :  { %827 = vmatpush.msra.mxu0 %v2227_v52  ;;  %847 = vmatpush.msra.mxu1 %v2230_v62 }
 0x186   :  { %867 = vmatpush.msra.mxu2 %v2233_v61  ;;  %887 = vmatpush.msra.mxu3 %v2236_v1 }
 0x187   :  { %828 = vmatpush.msra.mxu0 %v2239_v0  ;;  %848 = vmatpush.msra.mxu1 %v2242_v54 }
 0x188   :  { %868 = vmatpush.msra.mxu2 %v1794_v16  ;;  %888 = vmatpush.msra.mxu3 %v1796_v17  ;;  %v2877_v16 = vld [vmem:[#allocation20_spill] sm:$0xff]  ;;  %v2878_v17 = vld [vmem:[#allocation21_spill] sm:$0xff] }
 0x189   :  { %829 = vmatpush.msra.mxu0 %v1800_v18  ;;  %849 = vmatpush.msra.mxu1 %v1802_v19  ;;  %v2879_v18 = vld [vmem:[#allocation22_spill] sm:$0xff]  ;;  %v2880_v19 = vld [vmem:[#allocation23_spill] sm:$0xff] }
 0x18a   :  { %869 = vmatpush.msra.mxu2 %v1806_v20  ;;  %889 = vmatpush.msra.mxu3 %v1808_v21  ;;  %v2881_v20 = vld [vmem:[#allocation24_spill] sm:$0xff]  ;;  %v2882_v21 = vld [vmem:[#allocation25_spill] sm:$0xff] }
 0x18b   :  { %830 = vmatpush.msra.mxu0 %v1812_v22  ;;  %850 = vmatpush.msra.mxu1 %v1814_v23  ;;  %v2883_v22 = vld [vmem:[#allocation26_spill] sm:$0xff]  ;;  %v2884_v23 = vld [vmem:[#allocation27_spill] sm:$0xff] }
 0x18c   :  { %870 = vmatpush.msra.mxu2 %v1818_v24  ;;  %890 = vmatpush.msra.mxu3 %v1820_v25  ;;  %v2885_v24 = vld [vmem:[#allocation28_spill] sm:$0xff]  ;;  %v2886_v25 = vld [vmem:[#allocation29_spill] sm:$0xff] }
 0x18d   :  { %831 = vmatpush.msra.mxu0 %v1824_v26  ;;  %851 = vmatpush.msra.mxu1 %v1826_v27  ;;  %v2887_v26 = vld [vmem:[#allocation30_spill] sm:$0xff]  ;;  %v2888_v27 = vld [vmem:[#allocation31_spill] sm:$0xff] }
 0x18e   :  { %871 = vmatpush.msra.mxu2 %v1830_v28  ;;  %891 = vmatpush.msra.mxu3 %v1832_v29  ;;  %v128_v28 = vpop.permute.xlu1 %127  ;;  %v2889_v29 = vld [vmem:[#allocation32_spill] sm:$0xff] }
 0x18f   :  { %832 = vmatpush.msra.mxu0 %v1836_v30  ;;  %852 = vmatpush.msra.mxu1 %v1838_v31  ;;  %v172_v30 = vmul.f32 %v2889_v29, %v128_v28  ;;  %v2890_v31 = vld [vmem:[#allocation33_spill] sm:$0xff]  ;;  %v175_v53 = vmul.f32 %v2895_v45, %v128_v28 }
 0x190   :  { %872 = vmatpush.msra.mxu2 %v1842_v32  ;;  %892 = vmatpush.msra.mxu3 %v1844_v33  ;;  %v173_v32 = vmul.f32 %v2890_v31, %v128_v28  ;;  %v2891_v33 = vld [vmem:[#allocation34_spill] sm:$0xff] }
 0x191   :  { %833 = vmatpush.msra.mxu0 %v1848_v34  ;;  %853 = vmatpush.msra.mxu1 %v1850_v35  ;;  %v213_v34 = vadd.f32 %v2891_v33, %v172_v30  ;;  %v2892_v35 = vld [vmem:[#allocation35_spill] sm:$0xff]  ;;  %v216_v49 = vadd.f32 %v2896_v55, %v175_v53 }
 0x192   :  { %873 = vmatpush.msra.mxu2 %v1854_v36  ;;  %893 = vmatpush.msra.mxu3 %v1856_v37  ;;  %v214_v36 = vadd.f32 %v2892_v35, %v173_v32 }
 0x193   :  { %834 = vmatpush.msra.mxu0 %v1860_v38  ;;  %854 = vmatpush.msra.mxu1 %v1862_v39 }
 0x194   :  { %874 = vmatpush.msra.mxu2 %v2843_v2  ;;  %894 = vmatpush.msra.mxu3 %v2844_v3  ;;  %v2893_v3 = vld [vmem:[#allocation36_spill] sm:$0xff] }
 0x195   :  { %835 = vmatpush.msra.mxu0 %v2845_v4  ;;  %855 = vmatpush.msra.mxu1 %v2846_v5  ;;  %v174_v4 = vmul.f32 %v2893_v3, %v128_v28 }
 0x196   :  { %875 = vmatpush.msra.mxu2 %v2847_v6  ;;  %895 = vmatpush.msra.mxu3 %v2848_v7  ;;  %v2894_v7 = vld [vmem:[#allocation37_spill] sm:$0xff] }
 0x197   :  { %836 = vmatpush.msra.mxu0 %v2849_v8  ;;  %856 = vmatpush.msra.mxu1 %v2850_v9  ;;  %v215_v8 = vadd.f32 %v2894_v7, %v174_v4 }
 0x198   :  { %876 = vmatpush.msra.mxu2 %v2851_v10  ;;  %896 = vmatpush.msra.mxu3 %v2852_v11 }
 0x199   :  { %837 = vmatpush.msra.mxu0 %v2853_v12  ;;  %857 = vmatpush.msra.mxu1 %v2854_v13 }
 0x19a   :  { %877 = vmatpush.msra.mxu2 %v2855_v14  ;;  %897 = vmatpush.msra.mxu3 %v2856_v15 }
 0x19b   :  { %838 = vmatpush.msra.mxu0 %v2877_v16  ;;  %858 = vmatpush.msra.mxu1 %v2878_v17 }
 0x19c   :  { %878 = vmatpush.msra.mxu2 %v2879_v18  ;;  %898 = vmatpush.msra.mxu3 %v2880_v19 }
 0x19d   :  { %839 = vmatpush.msra.mxu0 %v2881_v20  ;;  %859 = vmatpush.msra.mxu1 %v2882_v21 }
 0x19e   :  { %879 = vmatpush.msra.mxu2 %v2883_v22  ;;  %899 = vmatpush.msra.mxu3 %v2884_v23 }
 0x19f   :  { %840 = vmatpush.msra.mxu0 %v2885_v24  ;;  %860 = vmatpush.msra.mxu1 %v2886_v25 }
 0x1a0   :  { %880 = vmatpush.msra.mxu2 %v2887_v26  ;;  %900 = vmatpush.msra.mxu3 %v2888_v27 }
 0x1fc   :  { %v548_v37 = vpop.f32.mrf.mxu0  ;;  %v568_v38 = vpop.f32.mrf.mxu1 }
 0x1fd   :  { %v611_v39 = vadd.f32 %v548_v37, %v213_v34  ;;  %v612_v2 = vadd.f32 %v568_v38, %v214_v36 }
 0x1ff   :  { %v1459_v5 = vmul.f32 -1.442695, %v611_v39  ;;  %v1460_v6 = vmul.f32 -1.442695, %v612_v2 }
 0x201   :  { %1520 = vpow2.f32 %v1459_v5 }
 0x202   :  { %1522 = vpow2.f32 %v1460_v6 }
 0x203   :  { %v588_v9 = vpop.f32.mrf.mxu2  ;;  %v608_v48 = vpop.f32.mrf.mxu3 }
 0x204   :  { %v613_v10 = vadd.f32 %v588_v9, %v215_v8  ;;  %v614_v47 = vadd.f32 %v608_v48, %v216_v49  ;;  %v2324_v48 = vld [vmem:[#allocation3 + $0x198] sm:$0xff]  ;;  %v2330_v49 = vld [vmem:[#allocation3 + $0x168] sm:$0xff] }
 0x206   :  { %v1461_v11 = vmul.f32 -1.442695, %v613_v10 }
 0x207   :  { %v1521_v12 = vpop.eup %1520 }
 0x208   :  { %v1523_v13 = vpop.eup %1522  ;;  %v624_v14 = vadd.f32 1.0, %v1521_v12  ;;  %1524 = vpow2.f32 %v1461_v11 }
 0x209   :  { %v625_v15 = vadd.f32 1.0, %v1523_v13 }
 0x20a   :  { %1526 = vrcp.f32 %v624_v14  ;;  %v638_v19 = vand.u32 2147483648, %v624_v14  ;;  %v636_v22 = vand.u32 2147483647, %v624_v14  ;;  %vm632_vm10 = vweird.f32 %v624_v14 }
 0x20b   :  { %1528 = vrcp.f32 %v625_v15  ;;  %v653_v20 = vand.u32 2147483648, %v625_v15  ;;  %v651_v24 = vand.u32 2147483647, %v625_v15  ;;  %vm647_vm11 = vweird.f32 %v625_v15 }
 0x20c   :  { %v639_v28 = vor.u32 1.1754944e-38, %v638_v19  ;;  %vm637_vm14 = vcmp.eq.f32.partialorder %v636_v22, 8.507059e+37  ;;  %v2357_v19 = vld [vmem:[#allocation3 + $0x130] sm:$0xff]  ;;  %v2366_v22 = vld [vmem:[#allocation3 + $0x108] sm:$0xff] }
 0x20d   :  { %v654_v32 = vor.u32 1.1754944e-38, %v653_v20  ;;  %vm652_vm15 = vcmp.eq.f32.partialorder %v651_v24, 8.507059e+37  ;;  %v2360_v20 = vld [vmem:[#allocation3 + $0x138] sm:$0xff] }
 0x20e   :  { %v1525_v60 = vpop.eup %1524  ;;  %v2372_v24 = vld [vmem:[#allocation3 + $0x118] sm:$0xff] }
 0x20f   :  { %v626_v56 = vadd.f32 1.0, %v1525_v60  ;;  %v2327_v60 = vld [vmem:[#allocation3 + $0x160] sm:$0xff] }
 0x210   :  { %v1527_v44 = vpop.eup %1526 }
 0x211   :  { %v1529_v43 = vpop.eup %1528  ;;  %v628_v42 = vmul.f32 %v1527_v44, %v624_v14  ;;  %1530 = vrcp.f32 %v626_v56  ;;  %vm633_vm8 = vweird.f32 %v1527_v44  ;;  %v668_v10 = vand.u32 2147483648, %v626_v56 }
 0x212   :  { %v643_v16 = vmul.f32 %v1529_v43, %v625_v15  ;;  %1532 = vtanh.f32 %v614_v47  ;;  %vm648_vm9 = vweird.f32 %v1529_v43  ;;  %vm634_vm12 = vmor %vm632_vm10, %vm633_vm8  ;;  %vm662_vm1 = vweird.f32 %v626_v56  ;;  %v2339_v47 = vld [vmem:[#allocation3 + $0x140] sm:$0xff] }
 0x213   :  { %v629_v17 = vsub.f32 1.0, %v628_v42  ;;  %vm649_vm13 = vmor %vm647_vm11, %vm648_vm9  ;;  %v666_v11 = vand.u32 2147483647, %v626_v56  ;;  %v669_v13 = vor.u32 1.1754944e-38, %v668_v10  ;;  %v2345_v42 = vld [vmem:[#allocation3 + $0x150] sm:$0xff]  ;;  %v2423_v10 = vld [vmem:[#allocation3 + $0x60] sm:$0xff] }
 0x214   :  { %v644_v18 = vsub.f32 1.0, %v643_v16  ;;  %v2348_v16 = vld [vmem:[#allocation3 + $0x158] sm:$0xff]  ;;  %2907 = vst [vmem:[#allocation16_spill] sm:$0xff] %v2423_v10 }
 0x215   :  { %v630_v21 = vmul.f32 %v1527_v44, %v629_v17  ;;  %vm667_vm3 = vcmp.eq.f32.partialorder %v666_v11, 8.507059e+37  ;;  %v2351_v17 = vld [vmem:[#allocation3 + $0x120] sm:$0xff]  ;;  %v2426_v11 = vld [vmem:[#allocation3 + $0x68] sm:$0xff] }
 0x216   :  { %v645_v23 = vmul.f32 %v1529_v43, %v644_v18  ;;  %v2354_v18 = vld [vmem:[#allocation3 + $0x128] sm:$0xff]  ;;  %2908 = vst [vmem:[#allocation17_spill] sm:$0xff] %v2426_v11 }
 0x217   :  { %v1531_v25 = vpop.eup %1530  ;;  %v631_v26 = vadd.f32 %v1527_v44, %v630_v21  ;;  %v2363_v21 = vld [vmem:[#allocation3 + $0x100] sm:$0xff] }
 0x218   :  { %v658_v27 = vmul.f32 %v1531_v25, %v626_v56  ;;  %v646_v30 = vadd.f32 %v1529_v43, %v645_v23  ;;  %v1533_v36 = vpop.eup %1532  ;;  %vm663_vm0 = vweird.f32 %v1531_v25  ;;  %v2333_v56 = vld [vmem:[#allocation3 + $0x170] sm:$0xff] }
 0x219   :  { %v635_v34 = vsel %vm634_vm12, %v1527_v44, %v631_v26  ;;  %vm664_vm2 = vmor %vm662_vm1, %vm663_vm0  ;;  %v2336_v44 = vld [vmem:[#allocation3 + $0x178] sm:$0xff]  ;;  %v2369_v23 = vld [vmem:[#allocation3 + $0x110] sm:$0xff] }
 0x21a   :  { %v659_v37 = vsub.f32 1.0, %v658_v27  ;;  %v640_v38 = vsel %vm637_vm14, %v639_v28, %v635_v34  ;;  %v650_v39 = vsel %vm649_vm13, %v1529_v43, %v646_v30  ;;  %v2342_v43 = vld [vmem:[#allocation3 + $0x148] sm:$0xff]  ;;  %v2381_v27 = vld [vmem:[#allocation3 + $0xf0] sm:$0xff]  ;;  %v2384_v28 = vld [vmem:[#allocation3 + $0xf8] sm:$0xff] }
 0x21b   :  { %v655_v2 = vsel %vm652_vm15, %v654_v32, %v650_v39  ;;  %v674_v4 = vmul.f32 %v1533_v36, %v640_v38  ;;  %v2378_v26 = vld [vmem:[#allocation3 + $0xe8] sm:$0xff]  ;;  %v2387_v30 = vld [vmem:[#allocation3 + $0xc0] sm:$0xff]  ;;  %v2393_v34 = vld [vmem:[#allocation3 + $0xd0] sm:$0xff] }
 0x21c   :  { %v673_v5 = vmul.f32 %v655_v2, %v2200_v46  ;;  %v660_v6 = vmul.f32 %v1531_v25, %v659_v37  ;;  %v2321_v46 = vld [vmem:[#allocation3 + $0x190] sm:$0xff]  ;;  %v2390_v32 = vld [vmem:[#allocation3 + $0xc8] sm:$0xff]  ;;  %2897 = vst [vmem:[#allocation6_spill] sm:$0xff] %v2393_v34  ;;  %v2396_v36 = vld [vmem:[#allocation3 + $0xd8] sm:$0xff] }
 0x21d   :  { %2898 = vst [vmem:[#allocation7_spill] sm:$0xff] %v2396_v36  ;;  %v2399_v37 = vld [vmem:[#allocation3 + $0xa0] sm:$0xff]  ;;  %v2402_v38 = vld [vmem:[#allocation3 + $0xa8] sm:$0xff]  ;;  %v2405_v39 = vld [vmem:[#allocation3 + $0xb0] sm:$0xff] }
 0x21e   :  { %v2304_v8 = vadd.f32 %v674_v4, %v673_v5  ;;  %v661_v9 = vadd.f32 %v1531_v25, %v660_v6  ;;  %2899 = vst [vmem:[#allocation8_spill] sm:$0xff] %v2399_v37  ;;  %v2408_v2 = vld [vmem:[#allocation3 + $0xb8] sm:$0xff]  ;;  %v2411_v4 = vld [vmem:[#allocation3 + $0x80] sm:$0xff]  ;;  %v2414_v5 = vld [vmem:[#allocation3 + $0x88] sm:$0xff] }
 0x21f   :  { %2900 = vst [vmem:[#allocation9_spill] sm:$0xff] %v2402_v38  ;;  %v2417_v6 = vld [vmem:[#allocation3 + $0x90] sm:$0xff] }
 0x220   :  { %1534 = vtanh.f32 %v2304_v8  ;;  %v665_v12 = vsel %vm664_vm2, %v1531_v25, %v661_v9  ;;  %v2375_v25 = vld [vmem:[#allocation3 + $0xe0] sm:$0xff]  ;;  %2901 = vst [vmem:[#allocation10_spill] sm:$0xff] %v2405_v39  ;;  %v2420_v9 = vld [vmem:[#allocation3 + $0x98] sm:$0xff] }
 0x221   :  { %v670_v15 = vsel %vm667_vm3, %v669_v13, %v665_v12  ;;  %2902 = vst [vmem:[#allocation11_spill] sm:$0xff] %v2408_v2  ;;  %v2429_v12 = vld [vmem:[#allocation3 + $0x70] sm:$0xff]  ;;  %v2432_v13 = vld [vmem:[#allocation3 + $0x78] sm:$0xff] }
 0x222   :  { %2903 = vst [vmem:[#allocation12_spill] sm:$0xff] %v2411_v4 }
 0x223   :  { %2904 = vst [vmem:[#allocation13_spill] sm:$0xff] %v2414_v5 }
 0x224   :  { %2905 = vst [vmem:[#allocation14_spill] sm:$0xff] %v2417_v6 }
 0x225   :  { %2906 = vst [vmem:[#allocation15_spill] sm:$0xff] %v2420_v9 }
 0x226   :  { %v1535_v14 = vpop.eup %1534  ;;  %2909 = vst [vmem:[#allocation18_spill] sm:$0xff] %v2429_v12 }
 0x227   :  { %v677_v53 = vmul.f32 %v1535_v14, %v670_v15  ;;  %2910 = vst [vmem:[#allocation19_spill] sm:$0xff] %v2432_v13  ;;  %v2435_v14 = vld [vmem:[#allocation3 + $0x40] sm:$0xff]  ;;  %v2438_v15 = vld [vmem:[#allocation3 + $0x48] sm:$0xff] }
 0x228   :  { %2911 = vst [vmem:[#allocation20_spill] sm:$0xff] %v2435_v14 }
 0x229   :  { %694 = vmatmul.f32.vlgmr.msrb.gmra.mxu0 %v677_v53  ;;  %714 = vmatmul.f32.vlgmr.msrb.gmra.mxu1 %v677_v53  ;;  %2912 = vst [vmem:[#allocation21_spill] sm:$0xff] %v2438_v15 }
 0x22a   :  { %734 = vmatmul.f32.vlgmr.msrb.gmra.mxu2 %v677_v53  ;;  %754 = vmatmul.f32.vlgmr.msrb.gmra.mxu3 %v677_v53  ;;  %v2441_v53 = vld [vmem:[#allocation3 + $0x50] sm:$0xff] }
 0x22b   :  { %972 = vmatpush.msrb.mxu0 %v2203_v63  ;;  %992 = vmatpush.msrb.mxu1 %v2206_v40  ;;  %2913 = vst [vmem:[#allocation22_spill] sm:$0xff] %v2441_v53 }
 0x22c   :  { %1012 = vmatpush.msrb.mxu2 %v2209_v41  ;;  %1032 = vmatpush.msrb.mxu3 %v2212_v57 }
 0x22d   :  { %973 = vmatpush.msrb.mxu0 %v2215_v58  ;;  %993 = vmatpush.msrb.mxu1 %v2218_v59 }
 0x22e   :  { %1013 = vmatpush.msrb.mxu2 %v2221_v50  ;;  %1033 = vmatpush.msrb.mxu3 %v2224_v51 }
 0x22f   :  { %974 = vmatpush.msrb.mxu0 %v2227_v52  ;;  %994 = vmatpush.msrb.mxu1 %v2230_v62 }
 0x230   :  { %1014 = vmatpush.msrb.mxu2 %v2233_v61  ;;  %1034 = vmatpush.msrb.mxu3 %v2236_v1 }
 0x231   :  { %975 = vmatpush.msrb.mxu0 %v2239_v0  ;;  %995 = vmatpush.msrb.mxu1 %v2242_v54 }
 0x232   :  { %1015 = vmatpush.msrb.mxu2 %v2321_v46  ;;  %1035 = vmatpush.msrb.mxu3 %v2324_v48 }
 0x233   :  { %976 = vmatpush.msrb.mxu0 %v2327_v60  ;;  %996 = vmatpush.msrb.mxu1 %v2330_v49 }
 0x234   :  { %1016 = vmatpush.msrb.mxu2 %v2333_v56  ;;  %1036 = vmatpush.msrb.mxu3 %v2336_v44 }
 0x235   :  { %977 = vmatpush.msrb.mxu0 %v2339_v47  ;;  %997 = vmatpush.msrb.mxu1 %v2342_v43 }
 0x236   :  { %1017 = vmatpush.msrb.mxu2 %v2345_v42  ;;  %1037 = vmatpush.msrb.mxu3 %v2348_v16 }
 0x237   :  { %978 = vmatpush.msrb.mxu0 %v2351_v17  ;;  %998 = vmatpush.msrb.mxu1 %v2354_v18 }
 0x238   :  { %1018 = vmatpush.msrb.mxu2 %v2357_v19  ;;  %1038 = vmatpush.msrb.mxu3 %v2360_v20 }
 0x239   :  { %979 = vmatpush.msrb.mxu0 %v2363_v21  ;;  %999 = vmatpush.msrb.mxu1 %v2366_v22 }
 0x23a   :  { %1019 = vmatpush.msrb.mxu2 %v2369_v23  ;;  %1039 = vmatpush.msrb.mxu3 %v2372_v24 }
 0x23b   :  { %980 = vmatpush.msrb.mxu0 %v2375_v25  ;;  %1000 = vmatpush.msrb.mxu1 %v2378_v26 }
 0x23c   :  { %1020 = vmatpush.msrb.mxu2 %v2381_v27  ;;  %1040 = vmatpush.msrb.mxu3 %v2384_v28 }
 0x23d   :  { %981 = vmatpush.msrb.mxu0 %v2387_v30  ;;  %1001 = vmatpush.msrb.mxu1 %v2390_v32 }
 0x23e   :  { %1021 = vmatpush.msrb.mxu2 %v2393_v34  ;;  %1041 = vmatpush.msrb.mxu3 %v2396_v36 }
 0x23f   :  { %982 = vmatpush.msrb.mxu0 %v2399_v37  ;;  %1002 = vmatpush.msrb.mxu1 %v2402_v38 }
 0x240   :  { %1022 = vmatpush.msrb.mxu2 %v2405_v39  ;;  %1042 = vmatpush.msrb.mxu3 %v2408_v2 }
 0x241   :  { %983 = vmatpush.msrb.mxu0 %v2411_v4  ;;  %1003 = vmatpush.msrb.mxu1 %v2414_v5 }
 0x242   :  { %1023 = vmatpush.msrb.mxu2 %v2417_v6  ;;  %1043 = vmatpush.msrb.mxu3 %v2420_v9 }
 0x243   :  { %984 = vmatpush.msrb.mxu0 %v2423_v10  ;;  %1004 = vmatpush.msrb.mxu1 %v2426_v11  ;;  %v2444_v11 = vld [vmem:[#allocation3 + $0x58] sm:$0xff] }
 0x244   :  { %1024 = vmatpush.msrb.mxu2 %v2429_v12  ;;  %1044 = vmatpush.msrb.mxu3 %v2432_v13  ;;  %2914 = vst [vmem:[#allocation23_spill] sm:$0xff] %v2444_v11  ;;  %v2447_v12 = vld [vmem:[#allocation3 + $0x20] sm:$0xff]  ;;  %v2450_v13 = vld [vmem:[#allocation3 + $0x28] sm:$0xff] }
 0x245   :  { %985 = vmatpush.msrb.mxu0 %v2435_v14  ;;  %1005 = vmatpush.msrb.mxu1 %v2438_v15  ;;  %2915 = vst [vmem:[#allocation24_spill] sm:$0xff] %v2447_v12  ;;  %v2453_v14 = vld [vmem:[#allocation3 + $0x30] sm:$0xff]  ;;  %v2456_v15 = vld [vmem:[#allocation3 + $0x38] sm:$0xff] }
 0x246   :  { %1025 = vmatpush.msrb.mxu2 %v2441_v53  ;;  %1045 = vmatpush.msrb.mxu3 %v2444_v11  ;;  %2916 = vst [vmem:[#allocation25_spill] sm:$0xff] %v2450_v13  ;;  %v2459_v53 = vld [vmem:[#allocation3] sm:$0xff]  ;;  %v2462_v11 = vld [vmem:[#allocation3 + $0x8] sm:$0xff] }
 0x247   :  { %986 = vmatpush.msrb.mxu0 %v2447_v12  ;;  %1006 = vmatpush.msrb.mxu1 %v2450_v13  ;;  %2917 = vst [vmem:[#allocation26_spill] sm:$0xff] %v2453_v14  ;;  %v2465_v12 = vld [vmem:[#allocation3 + $0x10] sm:$0xff]  ;;  %v2468_v13 = vld [vmem:[#allocation3 + $0x18] sm:$0xff] }
 0x248   :  { %1026 = vmatpush.msrb.mxu2 %v2453_v14  ;;  %2918 = vst [vmem:[#allocation27_spill] sm:$0xff] %v2456_v15  ;;  %1046 = vmatpush.msrb.mxu3 %v2456_v15  ;;  %v133_v14 = vpop.permute.xlu1 %132 }
 0x249   :  { %2919 = vst [vmem:[#allocation28_spill] sm:$0xff] %v2459_v53  ;;  %987 = vmatpush.msrb.mxu0 %v2459_v53  ;;  %1007 = vmatpush.msrb.mxu1 %v2462_v11  ;;  %v176_v10 = vmul.f32 %v2889_v29, %v133_v14  ;;  %v177_v15 = vmul.f32 %v2890_v31, %v133_v14 }
 0x24a   :  { %2920 = vst [vmem:[#allocation29_spill] sm:$0xff] %v2462_v11  ;;  %1027 = vmatpush.msrb.mxu2 %v2465_v12  ;;  %1047 = vmatpush.msrb.mxu3 %v2468_v13  ;;  %v178_v2 = vmul.f32 %v2893_v3, %v133_v14 }
 0x24b   :  { %2921 = vst [vmem:[#allocation30_spill] sm:$0xff] %v2465_v12  ;;  %v217_v9 = vadd.f32 %v2891_v33, %v176_v10  ;;  %v218_v53 = vadd.f32 %v2892_v35, %v177_v15 }
 0x24c   :  { %2922 = vst [vmem:[#allocation31_spill] sm:$0xff] %v2468_v13  ;;  %v219_v13 = vadd.f32 %v2894_v7, %v178_v2 }
 0x2a6   :  { %v695_v6 = vpop.f32.mrf.mxu0  ;;  %v715_v5 = vpop.f32.mrf.mxu1 }
 0x2a7   :  { %v758_v11 = vadd.f32 %v695_v6, %v217_v9  ;;  %v759_v4 = vadd.f32 %v715_v5, %v218_v53  ;;  %v179_v6 = vmul.f32 %v2895_v45, %v133_v14  ;;  %v110_v5 = vld [vmem:[%s2668_s0 + $0x8] sm:$0x3] }
 0x2a8   :  { %137 = vperm.xlu2 %1485, %v110_v5  }
 0x2a9   :  { %v1462_v12 = vmul.f32 -1.442695, %v758_v11  ;;  %v1463_v39 = vmul.f32 -1.442695, %v759_v4  ;;  %v220_v2 = vadd.f32 %v2896_v55, %v179_v6 }
 0x2ab   :  { %1536 = vpow2.f32 %v1462_v12 }
 0x2ac   :  { %1538 = vpow2.f32 %v1463_v39 }
 0x2ad   :  { %v735_v38 = vpop.f32.mrf.mxu2  ;;  %v755_v39 = vpop.f32.mrf.mxu3 }
 0x2ae   :  { %v760_v29 = vadd.f32 %v735_v38, %v219_v13  ;;  %v761_v9 = vadd.f32 %v755_v39, %v220_v2 }
 0x2b0   :  { %v1464_v37 = vmul.f32 -1.442695, %v760_v29 }
 0x2b1   :  { %v1537_v31 = vpop.eup %1536 }
 0x2b2   :  { %v1539_v36 = vpop.eup %1538  ;;  %v771_v10 = vadd.f32 1.0, %v1537_v31  ;;  %1540 = vpow2.f32 %v1464_v37  ;;  %v111_v31 = vld [vmem:[%s2668_s0 + $0xa] sm:$0x3] }
 0x2b3   :  { %v772_v15 = vadd.f32 1.0, %v1539_v36  ;;  %142 = vperm.xlu2 %1485, %v111_v31  }
 0x2b4   :  { %1542 = vrcp.f32 %v771_v10  ;;  %v785_v14 = vand.u32 2147483648, %v771_v10  ;;  %v783_v6 = vand.u32 2147483647, %v771_v10  ;;  %vm779_vm6 = vweird.f32 %v771_v10 }
 0x2b5   :  { %1544 = vrcp.f32 %v772_v15  ;;  %v800_v53 = vand.u32 2147483648, %v772_v15  ;;  %v798_v39 = vand.u32 2147483647, %v772_v15  ;;  %vm794_vm7 = vweird.f32 %v772_v15 }
 0x2b6   :  { %v786_v7 = vor.u32 1.1754944e-38, %v785_v14  ;;  %vm784_vm10 = vcmp.eq.f32.partialorder %v783_v6, 8.507059e+37  ;;  %v2929_v6 = vld [vmem:[#allocation12_spill] sm:$0xff] }
 0x2b7   :  { %v801_v31 = vor.u32 1.1754944e-38, %v800_v53  ;;  %vm799_vm11 = vcmp.eq.f32.partialorder %v798_v39, 8.507059e+37  ;;  %v2928_v53 = vld [vmem:[#allocation11_spill] sm:$0xff]  ;;  %v2931_v39 = vld [vmem:[#allocation14_spill] sm:$0xff] }
 0x2b8   :  { %v1541_v4 = vpop.eup %1540 }
 0x2b9   :  { %v773_v38 = vadd.f32 1.0, %v1541_v4 }
 0x2ba   :  { %v1543_v29 = vpop.eup %1542 }
 0x2bb   :  { %v1545_v36 = vpop.eup %1544  ;;  %v775_v37 = vmul.f32 %v1543_v29, %v771_v10  ;;  %1546 = vrcp.f32 %v773_v38  ;;  %vm780_vm4 = vweird.f32 %v1543_v29  ;;  %v815_v14 = vand.u32 2147483648, %v773_v38 }
 0x2bc   :  { %v790_v11 = vmul.f32 %v1545_v36, %v772_v15  ;;  %1548 = vtanh.f32 %v761_v9  ;;  %vm795_vm5 = vweird.f32 %v1545_v36  ;;  %vm781_vm8 = vmor %vm779_vm6, %vm780_vm4  ;;  %vm809_vm13 = vweird.f32 %v773_v38 }
 0x2bd   :  { %v776_v12 = vsub.f32 1.0, %v775_v37  ;;  %vm796_vm9 = vmor %vm794_vm7, %vm795_vm5 }
 0x2be   :  { %v791_v13 = vsub.f32 1.0, %v790_v11 }
 0x2bf   :  { %v777_v5 = vmul.f32 %v1543_v29, %v776_v12 }
 0x2c0   :  { %v792_v4 = vmul.f32 %v1545_v36, %v791_v13 }
 0x2c1   :  { %v1547_v2 = vpop.eup %1546  ;;  %v778_v55 = vadd.f32 %v1543_v29, %v777_v5 }
 0x2c2   :  { %v805_v45 = vmul.f32 %v1547_v2, %v773_v38  ;;  %v793_v3 = vadd.f32 %v1545_v36, %v792_v4  ;;  %v1549_v9 = vpop.eup %1548  ;;  %vm810_vm12 = vweird.f32 %v1547_v2  ;;  %v2930_v4 = vld [vmem:[#allocation13_spill] sm:$0xff] }
 0x2c3   :  { %v782_v37 = vsel %vm781_vm8, %v1543_v29, %v778_v55  ;;  %v813_v55 = vand.u32 2147483647, %v773_v38  ;;  %vm811_vm14 = vmor %vm809_vm13, %vm810_vm12  ;;  %v2926_v38 = vld [vmem:[#allocation9_spill] sm:$0xff] }
 0x2c4   :  { %v806_v11 = vsub.f32 1.0, %v805_v45  ;;  %v787_v12 = vsel %vm784_vm10, %v786_v7, %v782_v37  ;;  %v797_v35 = vsel %vm796_vm9, %v1545_v36, %v793_v3  ;;  %v816_v45 = vor.u32 1.1754944e-38, %v815_v14  ;;  %v2927_v36 = vld [vmem:[#allocation10_spill] sm:$0xff]  ;;  %v2934_v37 = vld [vmem:[#allocation17_spill] sm:$0xff]  ;;  %v2941_v14 = vld [vmem:[#allocation24_spill] sm:$0xff] }
 0x2c5   :  { %v802_v13 = vsel %vm799_vm11, %v801_v31, %v797_v35  ;;  %v821_v33 = vmul.f32 %v1549_v9, %v787_v12  ;;  %vm814_vm15 = vcmp.eq.f32.partialorder %v813_v55, 8.507059e+37  ;;  %v2933_v31 = vld [vmem:[#allocation16_spill] sm:$0xff]  ;;  %v2935_v9 = vld [vmem:[#allocation18_spill] sm:$0xff]  ;;  %v2942_v55 = vld [vmem:[#allocation25_spill] sm:$0xff] }
 0x2c6   :  { %v820_v34 = vmul.f32 %v802_v13, %v2304_v8  ;;  %v807_v5 = vmul.f32 %v1547_v2, %v806_v11  ;;  %v2924_v8 = vld [vmem:[#allocation7_spill] sm:$0xff]  ;;  %v2937_v12 = vld [vmem:[#allocation20_spill] sm:$0xff]  ;;  %v2938_v13 = vld [vmem:[#allocation21_spill] sm:$0xff] }
 0x2c7   :  { %v2936_v11 = vld [vmem:[#allocation19_spill] sm:$0xff] }
 0x2c8   :  { %v2486_v10 = vadd.f32 %v821_v33, %v820_v34  ;;  %v808_v15 = vadd.f32 %v1547_v2, %v807_v5  ;;  %v2923_v33 = vld [vmem:[#allocation6_spill] sm:$0xff]  ;;  %v2925_v34 = vld [vmem:[#allocation8_spill] sm:$0xff] }
 0x2c9   :  { %v2939_v5 = vld [vmem:[#allocation22_spill] sm:$0xff] }
 0x2ca   :  { %1550 = vtanh.f32 %v2486_v10  ;;  %v812_v29 = vsel %vm811_vm14, %v1547_v2, %v808_v15  ;;  %v2932_v2 = vld [vmem:[#allocation15_spill] sm:$0xff] }
 0x2cb   :  { %v817_v7 = vsel %vm814_vm15, %v816_v45, %v812_v29  ;;  %v2940_v15 = vld [vmem:[#allocation23_spill] sm:$0xff]  ;;  %v2943_v29 = vld [vmem:[#allocation26_spill] sm:$0xff] }
 0x2cc   :  { %v2944_v45 = vld [vmem:[#allocation27_spill] sm:$0xff] }
 0x2d0   :  { %v1551_v3 = vpop.eup %1550 }
 0x2d1   :  { %v824_v35 = vmul.f32 %v1551_v3, %v817_v7  ;;  %v2945_v3 = vld [vmem:[#allocation28_spill] sm:$0xff]  ;;  %v2946_v7 = vld [vmem:[#allocation29_spill] sm:$0xff] }
 0x2d3   :  { %841 = vmatmul.f32.vlgmr.msra.gmra.mxu0 %v824_v35  ;;  %861 = vmatmul.f32.vlgmr.msra.gmra.mxu1 %v824_v35 }
 0x2d4   :  { %881 = vmatmul.f32.vlgmr.msra.gmra.mxu2 %v824_v35  ;;  %901 = vmatmul.f32.vlgmr.msra.gmra.mxu3 %v824_v35  ;;  %v2947_v35 = vld [vmem:[#allocation30_spill] sm:$0xff] }
 0x2d5   :  { %1119 = vmatpush.msra.mxu0 %v2203_v63  ;;  %1139 = vmatpush.msra.mxu1 %v2206_v40 }
 0x2d6   :  { %1159 = vmatpush.msra.mxu2 %v2209_v41  ;;  %1179 = vmatpush.msra.mxu3 %v2212_v57 }
 0x2d7   :  { %1120 = vmatpush.msra.mxu0 %v2215_v58  ;;  %1140 = vmatpush.msra.mxu1 %v2218_v59 }
 0x2d8   :  { %1160 = vmatpush.msra.mxu2 %v2221_v50  ;;  %1180 = vmatpush.msra.mxu3 %v2224_v51 }
 0x2d9   :  { %1121 = vmatpush.msra.mxu0 %v2227_v52  ;;  %1141 = vmatpush.msra.mxu1 %v2230_v62 }
 0x2da   :  { %1161 = vmatpush.msra.mxu2 %v2233_v61  ;;  %1181 = vmatpush.msra.mxu3 %v2236_v1 }
 0x2db   :  { %1122 = vmatpush.msra.mxu0 %v2239_v0  ;;  %1142 = vmatpush.msra.mxu1 %v2242_v54 }
 0x2dc   :  { %1162 = vmatpush.msra.mxu2 %v2321_v46  ;;  %1182 = vmatpush.msra.mxu3 %v2324_v48 }
 0x2dd   :  { %1123 = vmatpush.msra.mxu0 %v2327_v60  ;;  %1143 = vmatpush.msra.mxu1 %v2330_v49 }
 0x2de   :  { %1163 = vmatpush.msra.mxu2 %v2333_v56  ;;  %1183 = vmatpush.msra.mxu3 %v2336_v44 }
 0x2df   :  { %1124 = vmatpush.msra.mxu0 %v2339_v47  ;;  %1144 = vmatpush.msra.mxu1 %v2342_v43 }
 0x2e0   :  { %1164 = vmatpush.msra.mxu2 %v2345_v42  ;;  %1184 = vmatpush.msra.mxu3 %v2348_v16 }
 0x2e1   :  { %1125 = vmatpush.msra.mxu0 %v2351_v17  ;;  %1145 = vmatpush.msra.mxu1 %v2354_v18 }
 0x2e2   :  { %1165 = vmatpush.msra.mxu2 %v2357_v19  ;;  %1185 = vmatpush.msra.mxu3 %v2360_v20 }
 0x2e3   :  { %1126 = vmatpush.msra.mxu0 %v2363_v21  ;;  %1146 = vmatpush.msra.mxu1 %v2366_v22 }
 0x2e4   :  { %1166 = vmatpush.msra.mxu2 %v2369_v23  ;;  %1186 = vmatpush.msra.mxu3 %v2372_v24 }
 0x2e5   :  { %1127 = vmatpush.msra.mxu0 %v2375_v25  ;;  %1147 = vmatpush.msra.mxu1 %v2378_v26 }
 0x2e6   :  { %1167 = vmatpush.msra.mxu2 %v2381_v27  ;;  %1187 = vmatpush.msra.mxu3 %v2384_v28 }
 0x2e7   :  { %1128 = vmatpush.msra.mxu0 %v2387_v30  ;;  %1148 = vmatpush.msra.mxu1 %v2390_v32 }
 0x2e8   :  { %1168 = vmatpush.msra.mxu2 %v2923_v33  ;;  %1188 = vmatpush.msra.mxu3 %v2924_v8 }
 0x2e9   :  { %1129 = vmatpush.msra.mxu0 %v2925_v34  ;;  %1149 = vmatpush.msra.mxu1 %v2926_v38 }
 0x2ea   :  { %1169 = vmatpush.msra.mxu2 %v2927_v36  ;;  %1189 = vmatpush.msra.mxu3 %v2928_v53 }
 0x2eb   :  { %1130 = vmatpush.msra.mxu0 %v2929_v6  ;;  %1150 = vmatpush.msra.mxu1 %v2930_v4 }
 0x2ec   :  { %1170 = vmatpush.msra.mxu2 %v2931_v39  ;;  %1190 = vmatpush.msra.mxu3 %v2932_v2 }
 0x2ed   :  { %1131 = vmatpush.msra.mxu0 %v2933_v31  ;;  %1151 = vmatpush.msra.mxu1 %v2934_v37 }
 0x2ee   :  { %1171 = vmatpush.msra.mxu2 %v2935_v9  ;;  %1191 = vmatpush.msra.mxu3 %v2936_v11 }
 0x2ef   :  { %1132 = vmatpush.msra.mxu0 %v2937_v12  ;;  %1152 = vmatpush.msra.mxu1 %v2938_v13  ;;  %v2948_v12 = vld [vmem:[#allocation31_spill] sm:$0xff] }
 0x2f0   :  { %1172 = vmatpush.msra.mxu2 %v2939_v5  ;;  %1192 = vmatpush.msra.mxu3 %v2940_v15  ;;  %v2949_v5 = vld [vmem:[#allocation32_spill] sm:$0xff]  ;;  %v2950_v15 = vld [vmem:[#allocation33_spill] sm:$0xff] }
 0x2f1   :  { %1133 = vmatpush.msra.mxu0 %v2941_v14  ;;  %1153 = vmatpush.msra.mxu1 %v2942_v55  ;;  %v2951_v14 = vld [vmem:[#allocation34_spill] sm:$0xff]  ;;  %v2952_v55 = vld [vmem:[#allocation35_spill] sm:$0xff] }
 0x2f2   :  { %1173 = vmatpush.msra.mxu2 %v2943_v29  ;;  %1193 = vmatpush.msra.mxu3 %v2944_v45 }
 0x2f3   :  { %1134 = vmatpush.msra.mxu0 %v2945_v3  ;;  %1154 = vmatpush.msra.mxu1 %v2946_v7  ;;  %v2953_v3 = vld [vmem:[#allocation36_spill] sm:$0xff] }
 0x2f4   :  { %1174 = vmatpush.msra.mxu2 %v2947_v35  ;;  %1194 = vmatpush.msra.mxu3 %v2948_v12  ;;  %v2954_v12 = vld [vmem:[#allocation37_spill] sm:$0xff] }
 0x302   :  { %v138_v13 = vpop.permute.xlu2 %137 }
 0x303   :  { %v180_v11 = vmul.f32 %v2949_v5, %v138_v13  ;;  %v181_v9 = vmul.f32 %v2950_v15, %v138_v13  ;;  %v182_v4 = vmul.f32 %v2953_v3, %v138_v13 }
 0x305   :  { %v221_v37 = vadd.f32 %v2951_v14, %v180_v11  ;;  %v222_v31 = vadd.f32 %v2952_v55, %v181_v9  ;;  %v223_v35 = vadd.f32 %v2954_v12, %v182_v4  ;;  %v2955_v55 = vld [vmem:[#allocation38_spill] sm:$0xff] }
 0x350   :  { %v842_v29 = vpop.f32.mrf.mxu0  ;;  %v862_v2 = vpop.f32.mrf.mxu1 }
 0x351   :  { %v905_v45 = vadd.f32 %v842_v29, %v221_v37  ;;  %v906_v39 = vadd.f32 %v862_v2, %v222_v31  ;;  %v183_v37 = vmul.f32 %v2955_v55, %v138_v13  ;;  %v2956_v29 = vld [vmem:[#allocation39_spill] sm:$0xff] }
 0x353   :  { %v1465_v7 = vmul.f32 -1.442695, %v905_v45  ;;  %v1466_v6 = vmul.f32 -1.442695, %v906_v39  ;;  %v224_v39 = vadd.f32 %v2956_v29, %v183_v37 }
 0x355   :  { %1552 = vpow2.f32 %v1465_v7 }
 0x356   :  { %1554 = vpow2.f32 %v1466_v6 }
 0x357   :  { %v882_v53 = vpop.f32.mrf.mxu2  ;;  %v902_v2 = vpop.f32.mrf.mxu3 }
 0x358   :  { %v907_v5 = vadd.f32 %v882_v53, %v223_v35  ;;  %v908_v7 = vadd.f32 %v902_v2, %v224_v39 }
 0x35a   :  { %v1467_v36 = vmul.f32 -1.442695, %v907_v5 }
 0x35b   :  { %v1553_v15 = vpop.eup %1552 }
 0x35c   :  { %v1555_v38 = vpop.eup %1554  ;;  %v918_v11 = vadd.f32 1.0, %v1553_v15  ;;  %1556 = vpow2.f32 %v1467_v36 }
 0x35d   :  { %v919_v9 = vadd.f32 1.0, %v1555_v38 }
 0x35e   :  { %1558 = vrcp.f32 %v918_v11  ;;  %v932_v15 = vand.u32 2147483648, %v918_v11  ;;  %v930_v13 = vand.u32 2147483647, %v918_v11  ;;  %vm926_vm2 = vweird.f32 %v918_v11 }
 0x35f   :  { %1560 = vrcp.f32 %v919_v9  ;;  %v947_v38 = vand.u32 2147483648, %v919_v9  ;;  %v945_v3 = vand.u32 2147483647, %v919_v9  ;;  %vm941_vm3 = vweird.f32 %v919_v9 }
 0x360   :  { %vm931_vm6 = vcmp.eq.f32.partialorder %v930_v13, 8.507059e+37 }
 0x361   :  { %vm946_vm7 = vcmp.eq.f32.partialorder %v945_v3, 8.507059e+37 }
 0x362   :  { %v1557_v31 = vpop.eup %1556 }
 0x363   :  { %v920_v45 = vadd.f32 1.0, %v1557_v31  ;;  %v933_v31 = vor.u32 1.1754944e-38, %v932_v15 }
 0x364   :  { %v1559_v6 = vpop.eup %1558 }
 0x365   :  { %v1561_v4 = vpop.eup %1560  ;;  %v922_v12 = vmul.f32 %v1559_v6, %v918_v11  ;;  %1562 = vrcp.f32 %v920_v45  ;;  %vm927_vm0 = vweird.f32 %v1559_v6  ;;  %vm956_vm9 = vweird.f32 %v920_v45 }
 0x366   :  { %v937_v53 = vmul.f32 %v1561_v4, %v919_v9  ;;  %1564 = vtanh.f32 %v908_v7  ;;  %vm942_vm1 = vweird.f32 %v1561_v4  ;;  %vm928_vm4 = vmor %vm926_vm2, %vm927_vm0 }
 0x367   :  { %v923_v5 = vsub.f32 1.0, %v922_v12  ;;  %vm943_vm5 = vmor %vm941_vm3, %vm942_vm1  ;;  %v948_v12 = vor.u32 1.1754944e-38, %v947_v38 }
 0x368   :  { %v938_v35 = vsub.f32 1.0, %v937_v53 }
 0x369   :  { %v924_v36 = vmul.f32 %v1559_v6, %v923_v5 }
 0x36a   :  { %v939_v55 = vmul.f32 %v1561_v4, %v938_v35 }
 0x36b   :  { %v1563_v14 = vpop.eup %1562  ;;  %v925_v37 = vadd.f32 %v1559_v6, %v924_v36 }
 0x36c   :  { %v952_v2 = vmul.f32 %v1563_v14, %v920_v45  ;;  %v940_v39 = vadd.f32 %v1561_v4, %v939_v55  ;;  %v1565_v7 = vpop.eup %1564  ;;  %vm957_vm8 = vweird.f32 %v1563_v14  ;;  %v962_v55 = vand.u32 2147483648, %v920_v45 }
 0x36d   :  { %v929_v53 = vsel %vm928_vm4, %v1559_v6, %v925_v37  ;;  %v960_v6 = vand.u32 2147483647, %v920_v45  ;;  %vm958_vm10 = vmor %vm956_vm9, %vm957_vm8  ;;  %v2988_v45 = vld [vmem:[#allocation37_spill] sm:$0xff] }
 0x36e   :  { %v953_v29 = vsub.f32 1.0, %v952_v2  ;;  %v934_v5 = vsel %vm931_vm6, %v933_v31, %v929_v53  ;;  %v944_v34 = vsel %vm943_vm5, %v1561_v4, %v940_v39  ;;  %v963_v38 = vor.u32 1.1754944e-38, %v962_v55  ;;  %v2990_v55 = vld [vmem:[#allocation39_spill] sm:$0xff] }
 0x36f   :  { %v949_v35 = vsel %vm946_vm7, %v948_v12, %v944_v34  ;;  %v968_v8 = vmul.f32 %v1565_v7, %v934_v5  ;;  %vm961_vm11 = vcmp.eq.f32.partialorder %v960_v6, 8.507059e+37  ;;  %v2989_v5 = vld [vmem:[#allocation38_spill] sm:$0xff] }
 0x370   :  { %v967_v33 = vmul.f32 %v949_v35, %v2486_v10  ;;  %v954_v36 = vmul.f32 %v1563_v14, %v953_v29 }
 0x372   :  { %v2562_v11 = vadd.f32 %v968_v8, %v967_v33  ;;  %v955_v9 = vadd.f32 %v1563_v14, %v954_v36  ;;  %v2987_v33 = vld [vmem:[#allocation36_spill] sm:$0xff] }
 0x374   :  { %1566 = vtanh.f32 %v2562_v11  ;;  %v959_v15 = vsel %vm958_vm10, %v1563_v14, %v955_v9 }
 0x375   :  { %v964_v3 = vsel %vm961_vm11, %v963_v38, %v959_v15 }
 0x37a   :  { %v1567_v4 = vpop.eup %1566 }
 0x37b   :  { %v971_v34 = vmul.f32 %v1567_v4, %v964_v3 }
 0x37d   :  { %988 = vmatmul.f32.vlgmr.msrb.gmra.mxu0 %v971_v34  ;;  %1008 = vmatmul.f32.vlgmr.msrb.gmra.mxu1 %v971_v34 }
 0x37e   :  { %1028 = vmatmul.f32.vlgmr.msrb.gmra.mxu2 %v971_v34  ;;  %1048 = vmatmul.f32.vlgmr.msrb.gmra.mxu3 %v971_v34 }
 0x37f   :  { %1266 = vmatpush.msrb.mxu0 %v2203_v63  ;;  %1286 = vmatpush.msrb.mxu1 %v2206_v40  ;;  %v2957_v63 = vld [vmem:[#allocation6_spill] sm:$0xff]  ;;  %v2958_v40 = vld [vmem:[#allocation7_spill] sm:$0xff] }
 0x380   :  { %1306 = vmatpush.msrb.mxu2 %v2209_v41  ;;  %1326 = vmatpush.msrb.mxu3 %v2212_v57  ;;  %v2959_v41 = vld [vmem:[#allocation8_spill] sm:$0xff]  ;;  %v2960_v57 = vld [vmem:[#allocation9_spill] sm:$0xff] }
 0x381   :  { %1267 = vmatpush.msrb.mxu0 %v2215_v58  ;;  %1287 = vmatpush.msrb.mxu1 %v2218_v59  ;;  %v2961_v58 = vld [vmem:[#allocation10_spill] sm:$0xff]  ;;  %v2962_v59 = vld [vmem:[#allocation11_spill] sm:$0xff] }
 0x382   :  { %1307 = vmatpush.msrb.mxu2 %v2221_v50  ;;  %1327 = vmatpush.msrb.mxu3 %v2224_v51  ;;  %v2963_v50 = vld [vmem:[#allocation12_spill] sm:$0xff]  ;;  %v2964_v51 = vld [vmem:[#allocation13_spill] sm:$0xff] }
 0x383   :  { %1268 = vmatpush.msrb.mxu0 %v2227_v52  ;;  %1288 = vmatpush.msrb.mxu1 %v2230_v62  ;;  %v2965_v52 = vld [vmem:[#allocation14_spill] sm:$0xff]  ;;  %v2966_v62 = vld [vmem:[#allocation15_spill] sm:$0xff] }
 0x384   :  { %1308 = vmatpush.msrb.mxu2 %v2233_v61  ;;  %1328 = vmatpush.msrb.mxu3 %v2236_v1  ;;  %v2967_v61 = vld [vmem:[#allocation16_spill] sm:$0xff]  ;;  %v2968_v1 = vld [vmem:[#allocation17_spill] sm:$0xff] }
 0x385   :  { %1269 = vmatpush.msrb.mxu0 %v2239_v0  ;;  %1289 = vmatpush.msrb.mxu1 %v2242_v54  ;;  %v2969_v0 = vld [vmem:[#allocation18_spill] sm:$0xff]  ;;  %v2970_v54 = vld [vmem:[#allocation19_spill] sm:$0xff] }
 0x386   :  { %1309 = vmatpush.msrb.mxu2 %v2321_v46  ;;  %1329 = vmatpush.msrb.mxu3 %v2324_v48  ;;  %v2971_v46 = vld [vmem:[#allocation20_spill] sm:$0xff]  ;;  %v2972_v48 = vld [vmem:[#allocation21_spill] sm:$0xff] }
 0x387   :  { %1270 = vmatpush.msrb.mxu0 %v2327_v60  ;;  %1290 = vmatpush.msrb.mxu1 %v2330_v49  ;;  %v2973_v60 = vld [vmem:[#allocation22_spill] sm:$0xff]  ;;  %v2974_v49 = vld [vmem:[#allocation23_spill] sm:$0xff] }
 0x388   :  { %1310 = vmatpush.msrb.mxu2 %v2333_v56  ;;  %1330 = vmatpush.msrb.mxu3 %v2336_v44  ;;  %v2975_v56 = vld [vmem:[#allocation24_spill] sm:$0xff]  ;;  %v2976_v44 = vld [vmem:[#allocation25_spill] sm:$0xff] }
 0x389   :  { %1271 = vmatpush.msrb.mxu0 %v2339_v47  ;;  %1291 = vmatpush.msrb.mxu1 %v2342_v43  ;;  %v2977_v47 = vld [vmem:[#allocation26_spill] sm:$0xff]  ;;  %v2978_v43 = vld [vmem:[#allocation27_spill] sm:$0xff] }
 0x38a   :  { %1311 = vmatpush.msrb.mxu2 %v2345_v42  ;;  %1331 = vmatpush.msrb.mxu3 %v2348_v16  ;;  %v2979_v42 = vld [vmem:[#allocation28_spill] sm:$0xff]  ;;  %v2980_v16 = vld [vmem:[#allocation29_spill] sm:$0xff] }
 0x38b   :  { %1272 = vmatpush.msrb.mxu0 %v2351_v17  ;;  %1292 = vmatpush.msrb.mxu1 %v2354_v18  ;;  %v2981_v17 = vld [vmem:[#allocation30_spill] sm:$0xff]  ;;  %v2982_v18 = vld [vmem:[#allocation31_spill] sm:$0xff] }
 0x38c   :  { %1312 = vmatpush.msrb.mxu2 %v2357_v19  ;;  %1332 = vmatpush.msrb.mxu3 %v2360_v20  ;;  %v143_v19 = vpop.permute.xlu2 %142  ;;  %v2983_v20 = vld [vmem:[#allocation32_spill] sm:$0xff] }
 0x38d   :  { %1273 = vmatpush.msrb.mxu0 %v2363_v21  ;;  %1293 = vmatpush.msrb.mxu1 %v2366_v22  ;;  %v184_v21 = vmul.f32 %v2983_v20, %v143_v19  ;;  %v2984_v22 = vld [vmem:[#allocation33_spill] sm:$0xff]  ;;  %v186_v8 = vmul.f32 %v2987_v33, %v143_v19  ;;  %v187_v35 = vmul.f32 %v2989_v5, %v143_v19 }
 0x38e   :  { %1313 = vmatpush.msrb.mxu2 %v2369_v23  ;;  %1333 = vmatpush.msrb.mxu3 %v2372_v24  ;;  %v185_v23 = vmul.f32 %v2984_v22, %v143_v19  ;;  %v2985_v24 = vld [vmem:[#allocation34_spill] sm:$0xff] }
 0x38f   :  { %1274 = vmatpush.msrb.mxu0 %v2375_v25  ;;  %1294 = vmatpush.msrb.mxu1 %v2378_v26  ;;  %v225_v25 = vadd.f32 %v2985_v24, %v184_v21  ;;  %v2986_v26 = vld [vmem:[#allocation35_spill] sm:$0xff]  ;;  %v227_v13 = vadd.f32 %v2988_v45, %v186_v8  ;;  %v228_v6 = vadd.f32 %v2990_v55, %v187_v35 }
 0x390   :  { %1314 = vmatpush.msrb.mxu2 %v2381_v27  ;;  %1334 = vmatpush.msrb.mxu3 %v2384_v28  ;;  %v226_v27 = vadd.f32 %v2986_v26, %v185_v23 }
 0x391   :  { %1275 = vmatpush.msrb.mxu0 %v2387_v30  ;;  %1295 = vmatpush.msrb.mxu1 %v2390_v32 }
 0x392   :  { %1315 = vmatpush.msrb.mxu2 %v2957_v63  ;;  %1335 = vmatpush.msrb.mxu3 %v2958_v40 }
 0x393   :  { %1276 = vmatpush.msrb.mxu0 %v2959_v41  ;;  %1296 = vmatpush.msrb.mxu1 %v2960_v57 }
 0x394   :  { %1316 = vmatpush.msrb.mxu2 %v2961_v58  ;;  %1336 = vmatpush.msrb.mxu3 %v2962_v59 }
 0x395   :  { %1277 = vmatpush.msrb.mxu0 %v2963_v50  ;;  %1297 = vmatpush.msrb.mxu1 %v2964_v51 }
 0x396   :  { %1317 = vmatpush.msrb.mxu2 %v2965_v52  ;;  %1337 = vmatpush.msrb.mxu3 %v2966_v62 }
 0x397   :  { %1278 = vmatpush.msrb.mxu0 %v2967_v61  ;;  %1298 = vmatpush.msrb.mxu1 %v2968_v1 }
 0x398   :  { %1318 = vmatpush.msrb.mxu2 %v2969_v0  ;;  %1338 = vmatpush.msrb.mxu3 %v2970_v54 }
 0x399   :  { %1279 = vmatpush.msrb.mxu0 %v2971_v46  ;;  %1299 = vmatpush.msrb.mxu1 %v2972_v48 }
 0x39a   :  { %1319 = vmatpush.msrb.mxu2 %v2973_v60  ;;  %1339 = vmatpush.msrb.mxu3 %v2974_v49 }
 0x39b   :  { %1280 = vmatpush.msrb.mxu0 %v2975_v56  ;;  %1300 = vmatpush.msrb.mxu1 %v2976_v44 }
 0x39c   :  { %1320 = vmatpush.msrb.mxu2 %v2977_v47  ;;  %1340 = vmatpush.msrb.mxu3 %v2978_v43 }
 0x39d   :  { %1281 = vmatpush.msrb.mxu0 %v2979_v42  ;;  %1301 = vmatpush.msrb.mxu1 %v2980_v16 }
 0x39e   :  { %1321 = vmatpush.msrb.mxu2 %v2981_v17  ;;  %1341 = vmatpush.msrb.mxu3 %v2982_v18 }
 0x3fa   :  { %v989_v28 = vpop.f32.mrf.mxu0  ;;  %v1009_v30 = vpop.f32.mrf.mxu1 }
 0x3fb   :  { %v1052_v32 = vadd.f32 %v989_v28, %v225_v25  ;;  %v1053_v10 = vadd.f32 %v1009_v30, %v226_v27 }
 0x3fd   :  { %v1468_v14 = vmul.f32 -1.442695, %v1052_v32  ;;  %v1469_v29 = vmul.f32 -1.442695, %v1053_v10 }
 0x3ff   :  { %1568 = vpow2.f32 %v1468_v14 }
 0x400   :  { %1570 = vpow2.f32 %v1469_v29 }
 0x401   :  { %v1029_v37 = vpop.f32.mrf.mxu2  ;;  %v1049_v36 = vpop.f32.mrf.mxu3 }
 0x402   :  { %v1054_v2 = vadd.f32 %v1029_v37, %v227_v13  ;;  %v1055_v4 = vadd.f32 %v1049_v36, %v228_v6 }
 0x404   :  { %v1470_v31 = vmul.f32 -1.442695, %v1054_v2 }
 0x405   :  { %v1569_v39 = vpop.eup %1568 }
 0x406   :  { %v1571_v12 = vpop.eup %1570  ;;  %v1065_v53 = vadd.f32 1.0, %v1569_v39  ;;  %1572 = vpow2.f32 %v1470_v31 }
 0x407   :  { %v1066_v7 = vadd.f32 1.0, %v1571_v12 }
 0x408   :  { %1574 = vrcp.f32 %v1065_v53  ;;  %v1079_v57 = vand.u32 2147483648, %v1065_v53  ;;  %v1077_v50 = vand.u32 2147483647, %v1065_v53  ;;  %vm1073_vm14 = vweird.f32 %v1065_v53 }
 0x409   :  { %1576 = vrcp.f32 %v1066_v7  ;;  %v1094_v58 = vand.u32 2147483648, %v1066_v7  ;;  %v1092_v52 = vand.u32 2147483647, %v1066_v7  ;;  %vm1088_vm15 = vweird.f32 %v1066_v7 }
 0x40a   :  { %v1080_v0 = vor.u32 1.1754944e-38, %v1079_v57  ;;  %vm1078_vm2 = vcmp.eq.f32.partialorder %v1077_v50, 8.507059e+37 }
 0x40b   :  { %v1095_v46 = vor.u32 1.1754944e-38, %v1094_v58  ;;  %vm1093_vm3 = vcmp.eq.f32.partialorder %v1092_v52, 8.507059e+37 }
 0x40c   :  { %v1573_v9 = vpop.eup %1572 }
 0x40d   :  { %v1067_v15 = vadd.f32 1.0, %v1573_v9 }
 0x40e   :  { %v1575_v38 = vpop.eup %1574 }
 0x40f   :  { %v1577_v3 = vpop.eup %1576  ;;  %v1069_v34 = vmul.f32 %v1575_v38, %v1065_v53  ;;  %1578 = vrcp.f32 %v1067_v15  ;;  %vm1074_vm12 = vweird.f32 %v1575_v38  ;;  %v1109_v19 = vand.u32 2147483648, %v1067_v15 }
 0x410   :  { %v1084_v63 = vmul.f32 %v1577_v3, %v1066_v7  ;;  %1580 = vtanh.f32 %v1055_v4  ;;  %vm1089_vm13 = vweird.f32 %v1577_v3  ;;  %vm1075_vm0 = vmor %vm1073_vm14, %vm1074_vm12  ;;  %vm1103_vm5 = vweird.f32 %v1067_v15 }
 0x411   :  { %v1070_v40 = vsub.f32 1.0, %v1069_v34  ;;  %vm1090_vm1 = vmor %vm1088_vm15, %vm1089_vm13  ;;  %v1107_v21 = vand.u32 2147483647, %v1067_v15  ;;  %v1110_v25 = vor.u32 1.1754944e-38, %v1109_v19 }
 0x412   :  { %v1085_v41 = vsub.f32 1.0, %v1084_v63 }
 0x413   :  { %v1071_v59 = vmul.f32 %v1575_v38, %v1070_v40  ;;  %vm1108_vm7 = vcmp.eq.f32.partialorder %v1107_v21, 8.507059e+37 }
 0x414   :  { %v1086_v51 = vmul.f32 %v1577_v3, %v1085_v41 }
 0x415   :  { %v1579_v62 = vpop.eup %1578  ;;  %v1072_v61 = vadd.f32 %v1575_v38, %v1071_v59 }
 0x416   :  { %v1099_v1 = vmul.f32 %v1579_v62, %v1067_v15  ;;  %v1087_v54 = vadd.f32 %v1577_v3, %v1086_v51  ;;  %v1581_v60 = vpop.eup %1580  ;;  %vm1104_vm4 = vweird.f32 %v1579_v62 }
 0x417   :  { %v1076_v48 = vsel %vm1075_vm0, %v1575_v38, %v1072_v61  ;;  %vm1105_vm6 = vmor %vm1103_vm5, %vm1104_vm4 }
 0x418   :  { %v1100_v49 = vsub.f32 1.0, %v1099_v1  ;;  %v1081_v56 = vsel %vm1078_vm2, %v1080_v0, %v1076_v48  ;;  %v1091_v44 = vsel %vm1090_vm1, %v1577_v3, %v1087_v54 }
 0x419   :  { %v1096_v47 = vsel %vm1093_vm3, %v1095_v46, %v1091_v44  ;;  %v1115_v43 = vmul.f32 %v1581_v60, %v1081_v56 }
 0x41a   :  { %v1114_v42 = vmul.f32 %v1096_v47, %v2562_v11  ;;  %v1101_v16 = vmul.f32 %v1579_v62, %v1100_v49  ;;  %v148_v11 = vpop.permute.xlu0 %147 }
 0x41b   :  { %v188_v32 = vmul.f32 %v2983_v20, %v148_v11  ;;  %v189_v10 = vmul.f32 %v2984_v22, %v148_v11  ;;  %v190_v31 = vmul.f32 %v2987_v33, %v148_v11  ;;  %v191_v4 = vmul.f32 %v2989_v5, %v148_v11 }
 0x41c   :  { %v2638_v17 = vadd.f32 %v1115_v43, %v1114_v42  ;;  %v1102_v18 = vadd.f32 %v1579_v62, %v1101_v16 }
 0x41d   :  { %v229_v8 = vadd.f32 %v2985_v24, %v188_v32  ;;  %v230_v14 = vadd.f32 %v2986_v26, %v189_v10  ;;  %v231_v53 = vadd.f32 %v2988_v45, %v190_v31  ;;  %v232_v63 = vadd.f32 %v2990_v55, %v191_v4 }
 0x41e   :  { %1582 = vtanh.f32 %v2638_v17  ;;  %v1106_v23 = vsel %vm1105_vm6, %v1579_v62, %v1102_v18 }
 0x41f   :  { %v1111_v28 = vsel %vm1108_vm7, %v1110_v25, %v1106_v23 }
 0x424   :  { %v1583_v27 = vpop.eup %1582 }
 0x425   :  { %v1118_v30 = vmul.f32 %v1583_v27, %v1111_v28 }
 0x427   :  { %1135 = vmatmul.f32.vlgmr.msra.gmra.mxu0 %v1118_v30  ;;  %1155 = vmatmul.f32.vlgmr.msra.gmra.mxu1 %v1118_v30 }
 0x428   :  { %1175 = vmatmul.f32.vlgmr.msra.gmra.mxu2 %v1118_v30  ;;  %1195 = vmatmul.f32.vlgmr.msra.gmra.mxu3 %v1118_v30 }
 0x4a4   :  { %v1136_v29 = vpop.f32.mrf.mxu0  ;;  %v1156_v13 = vpop.f32.mrf.mxu1 }
 0x4a5   :  { %v1199_v37 = vadd.f32 %v1136_v29, %v229_v8  ;;  %v1200_v2 = vadd.f32 %v1156_v13, %v230_v14 }
 0x4a7   :  { %v1471_v39 = vmul.f32 -1.442695, %v1199_v37  ;;  %v1472_v12 = vmul.f32 -1.442695, %v1200_v2 }
 0x4a9   :  { %1584 = vpow2.f32 %v1471_v39 }
 0x4aa   :  { %1586 = vpow2.f32 %v1472_v12 }
 0x4ab   :  { %v1176_v7 = vpop.f32.mrf.mxu2  ;;  %v1196_v3 = vpop.f32.mrf.mxu3 }
 0x4ac   :  { %v1201_v35 = vadd.f32 %v1176_v7, %v231_v53  ;;  %v1202_v57 = vadd.f32 %v1196_v3, %v232_v63 }
 0x4ae   :  { %v1473_v36 = vmul.f32 -1.442695, %v1201_v35 }
 0x4af   :  { %v1585_v9 = vpop.eup %1584 }
 0x4b0   :  { %v1587_v6 = vpop.eup %1586  ;;  %v1212_v15 = vadd.f32 1.0, %v1585_v9  ;;  %1588 = vpow2.f32 %v1473_v36 }
 0x4b1   :  { %v1213_v38 = vadd.f32 1.0, %v1587_v6 }
 0x4b2   :  { %1590 = vrcp.f32 %v1212_v15  ;;  %v1226_v62 = vand.u32 2147483648, %v1212_v15  ;;  %v1224_v0 = vand.u32 2147483647, %v1212_v15  ;;  %vm1220_vm10 = vweird.f32 %v1212_v15 }
 0x4b3   :  { %1592 = vrcp.f32 %v1213_v38  ;;  %v1241_v61 = vand.u32 2147483648, %v1213_v38  ;;  %v1239_v46 = vand.u32 2147483647, %v1213_v38  ;;  %vm1235_vm11 = vweird.f32 %v1213_v38 }
 0x4b4   :  { %v1227_v56 = vor.u32 1.1754944e-38, %v1226_v62  ;;  %vm1225_vm14 = vcmp.eq.f32.partialorder %v1224_v0, 8.507059e+37 }
 0x4b5   :  { %v1242_v47 = vor.u32 1.1754944e-38, %v1241_v61  ;;  %vm1240_vm15 = vcmp.eq.f32.partialorder %v1239_v46, 8.507059e+37 }
 0x4b6   :  { %v1589_v34 = vpop.eup %1588 }
 0x4b7   :  { %v1214_v40 = vadd.f32 1.0, %v1589_v34 }
 0x4b8   :  { %v1591_v41 = vpop.eup %1590 }
 0x4b9   :  { %v1593_v58 = vpop.eup %1592  ;;  %v1216_v59 = vmul.f32 %v1591_v41, %v1212_v15  ;;  %1594 = vrcp.f32 %v1214_v40  ;;  %vm1221_vm8 = vweird.f32 %v1591_v41  ;;  %v1256_v11 = vand.u32 2147483648, %v1214_v40 }
 0x4ba   :  { %v1231_v50 = vmul.f32 %v1593_v58, %v1213_v38  ;;  %1596 = vtanh.f32 %v1202_v57  ;;  %vm1236_vm9 = vweird.f32 %v1593_v58  ;;  %vm1222_vm12 = vmor %vm1220_vm10, %vm1221_vm8  ;;  %vm1250_vm1 = vweird.f32 %v1214_v40 }
 0x4bb   :  { %v1217_v51 = vsub.f32 1.0, %v1216_v59  ;;  %vm1237_vm13 = vmor %vm1235_vm11, %vm1236_vm9  ;;  %v1254_v32 = vand.u32 2147483647, %v1214_v40  ;;  %v1257_v8 = vor.u32 1.1754944e-38, %v1256_v11 }
 0x4bc   :  { %v1232_v52 = vsub.f32 1.0, %v1231_v50 }
 0x4bd   :  { %v1218_v1 = vmul.f32 %v1591_v41, %v1217_v51  ;;  %vm1255_vm3 = vcmp.eq.f32.partialorder %v1254_v32, 8.507059e+37 }
 0x4be   :  { %v1233_v54 = vmul.f32 %v1593_v58, %v1232_v52 }
 0x4bf   :  { %v1595_v48 = vpop.eup %1594  ;;  %v1219_v60 = vadd.f32 %v1591_v41, %v1218_v1 }
 0x4c0   :  { %v1246_v49 = vmul.f32 %v1595_v48, %v1214_v40  ;;  %v1234_v44 = vadd.f32 %v1593_v58, %v1233_v54  ;;  %v1597_v42 = vpop.eup %1596  ;;  %vm1251_vm0 = vweird.f32 %v1595_v48 }
 0x4c1   :  { %v1223_v43 = vsel %vm1222_vm12, %v1591_v41, %v1219_v60  ;;  %vm1252_vm2 = vmor %vm1250_vm1, %vm1251_vm0  ;;  %vm1418_vm0 = vcmask 1041408  }
 0x4c2   :  { %v1247_v16 = vsub.f32 1.0, %v1246_v49  ;;  %v1228_v18 = vsel %vm1225_vm14, %v1227_v56, %v1223_v43  ;;  %v1238_v19 = vsel %vm1237_vm13, %v1593_v58, %v1234_v44 }
 0x4c3   :  { %v1243_v21 = vsel %vm1240_vm15, %v1242_v47, %v1238_v19  ;;  %v1262_v23 = vmul.f32 %v1597_v42, %v1228_v18 }
 0x4c4   :  { %v1261_v25 = vmul.f32 %v1243_v21, %v2638_v17  ;;  %v1248_v27 = vmul.f32 %v1595_v48, %v1247_v16  ;;  %v153_v17 = vpop.permute.xlu1 %152 }
 0x4c5   :  { %v192_v37 = vmul.f32 %v2983_v20, %v153_v17  ;;  %v193_v2 = vmul.f32 %v2984_v22, %v153_v17  ;;  %v194_v36 = vmul.f32 %v2987_v33, %v153_v17  ;;  %v195_v34 = vmul.f32 %v2989_v5, %v153_v17 }
 0x4c6   :  { %v2650_v28 = vadd.f32 %v1262_v23, %v1261_v25  ;;  %v1249_v30 = vadd.f32 %v1595_v48, %v1248_v27 }
 0x4c7   :  { %v233_v31 = vadd.f32 %v2985_v24, %v192_v37  ;;  %v234_v39 = vadd.f32 %v2986_v26, %v193_v2  ;;  %v235_v15 = vadd.f32 %v2988_v45, %v194_v36  ;;  %v236_v40 = vadd.f32 %v2990_v55, %v195_v34  ;;  %v1487_v37 = vld [vmem:[#allocation2] ss:$0 sm:$0xff] }
 0x4c8   :  { %1598 = vtanh.f32 %v2650_v28  ;;  %v1253_v10 = vsel %vm1252_vm2, %v1595_v48, %v1249_v30 }
 0x4c9   :  { %v1258_v29 = vsel %vm1255_vm3, %v1257_v8, %v1253_v10  ;;  %v1486_v8 = vld [vmem:[%s2672_s4] ss:$0 sm:$0xff]  ;;  %vm1446_vm3 = vcmask 1024  }
 0x4ce   :  { %v1599_v14 = vpop.eup %1598 }
 0x4cf   :  { %v1265_v13 = vmul.f32 %v1599_v14, %v1258_v29 }
 0x4d1   :  { %1282 = vmatmul.f32.vlgmr.msrb.gmra.mxu0 %v1265_v13  ;;  %1302 = vmatmul.f32.vlgmr.msrb.gmra.mxu1 %v1265_v13 }
 0x4d2   :  { %1322 = vmatmul.f32.vlgmr.msrb.gmra.mxu2 %v1265_v13  ;;  %1342 = vmatmul.f32.vlgmr.msrb.gmra.mxu3 %v1265_v13 }
 0x54e   :  { %v1283_v12 = vpop.f32.mrf.mxu0  ;;  %v1303_v53 = vpop.f32.mrf.mxu1 }
 0x54f   :  { %v1346_v7 = vadd.f32 %v1283_v12, %v233_v31  ;;  %v1347_v35 = vadd.f32 %v1303_v53, %v234_v39 }
 0x551   :  { %v1474_v9 = vmul.f32 -1.442695, %v1346_v7  ;;  %v1475_v6 = vmul.f32 -1.442695, %v1347_v35 }
 0x553   :  { %1600 = vpow2.f32 %v1474_v9 }
 0x554   :  { %1602 = vpow2.f32 %v1475_v6 }
 0x555   :  { %v1323_v38 = vpop.f32.mrf.mxu2  ;;  %v1343_v63 = vpop.f32.mrf.mxu3 }
 0x556   :  { %v1348_v20 = vadd.f32 %v1323_v38, %v235_v15  ;;  %v1349_v58 = vadd.f32 %v1343_v63, %v236_v40 }
 0x558   :  { %v1476_v4 = vmul.f32 -1.442695, %v1348_v20 }
 0x559   :  { %v1601_v22 = vpop.eup %1600 }
 0x55a   :  { %v1603_v3 = vpop.eup %1602  ;;  %v1359_v24 = vadd.f32 1.0, %v1601_v22  ;;  %1604 = vpow2.f32 %v1476_v4 }
 0x55b   :  { %v1360_v26 = vadd.f32 1.0, %v1603_v3 }
 0x55c   :  { %1606 = vrcp.f32 %v1359_v24  ;;  %v1373_v62 = vand.u32 2147483648, %v1359_v24  ;;  %v1371_v5 = vand.u32 2147483647, %v1359_v24  ;;  %vm1367_vm6 = vweird.f32 %v1359_v24 }
 0x55d   :  { %1608 = vrcp.f32 %v1360_v26  ;;  %v1388_v61 = vand.u32 2147483648, %v1360_v26  ;;  %v1386_v54 = vand.u32 2147483647, %v1360_v26  ;;  %vm1382_vm7 = vweird.f32 %v1360_v26 }
 0x55e   :  { %v1374_v60 = vor.u32 1.1754944e-38, %v1373_v62  ;;  %vm1372_vm10 = vcmp.eq.f32.partialorder %v1371_v5, 8.507059e+37 }
 0x55f   :  { %v1389_v56 = vor.u32 1.1754944e-38, %v1388_v61  ;;  %vm1387_vm11 = vcmp.eq.f32.partialorder %v1386_v54, 8.507059e+37 }
 0x560   :  { %v1605_v33 = vpop.eup %1604 }
 0x561   :  { %v1361_v41 = vadd.f32 1.0, %v1605_v33 }
 0x562   :  { %v1607_v57 = vpop.eup %1606 }
 0x563   :  { %v1609_v45 = vpop.eup %1608  ;;  %v1363_v59 = vmul.f32 %v1607_v57, %v1359_v24  ;;  %1610 = vrcp.f32 %v1361_v41  ;;  %vm1368_vm4 = vweird.f32 %v1607_v57  ;;  %v1403_v30 = vand.u32 2147483648, %v1361_v41 }
 0x564   :  { %v1378_v50 = vmul.f32 %v1609_v45, %v1360_v26  ;;  %1612 = vtanh.f32 %v1349_v58  ;;  %vm1383_vm5 = vweird.f32 %v1609_v45  ;;  %vm1369_vm8 = vmor %vm1367_vm6, %vm1368_vm4  ;;  %vm1397_vm13 = vweird.f32 %v1361_v41 }
 0x565   :  { %v1364_v51 = vsub.f32 1.0, %v1363_v59  ;;  %vm1384_vm9 = vmor %vm1382_vm7, %vm1383_vm5  ;;  %v1401_v11 = vand.u32 2147483647, %v1361_v41  ;;  %v1404_v10 = vor.u32 1.1754944e-38, %v1403_v30 }
 0x566   :  { %v1379_v52 = vsub.f32 1.0, %v1378_v50 }
 0x567   :  { %v1365_v1 = vmul.f32 %v1607_v57, %v1364_v51  ;;  %vm1402_vm15 = vcmp.eq.f32.partialorder %v1401_v11, 8.507059e+37 }
 0x568   :  { %v1380_v0 = vmul.f32 %v1609_v45, %v1379_v52 }
 0x569   :  { %v1611_v46 = vpop.eup %1610  ;;  %v1366_v55 = vadd.f32 %v1607_v57, %v1365_v1 }
 0x56a   :  { %v1393_v48 = vmul.f32 %v1611_v46, %v1361_v41  ;;  %v1381_v49 = vadd.f32 %v1609_v45, %v1380_v0  ;;  %v1613_v47 = vpop.eup %1612  ;;  %vm1398_vm12 = vweird.f32 %v1611_v46 }
 0x56b   :  { %v1370_v44 = vsel %vm1369_vm8, %v1607_v57, %v1366_v55  ;;  %vm1399_vm14 = vmor %vm1397_vm13, %vm1398_vm12 }
 0x56c   :  { %v1375_v43 = vsel %vm1372_vm10, %v1374_v60, %v1370_v44  ;;  %v1385_v42 = vsel %vm1384_vm9, %v1609_v45, %v1381_v49  ;;  %v1394_v16 = vsub.f32 1.0, %v1393_v48 }
 0x56d   :  { %v1390_v18 = vsel %vm1387_vm11, %v1389_v56, %v1385_v42  ;;  %v1409_v19 = vmul.f32 %v1613_v47, %v1375_v43 }
 0x56e   :  { %v1408_v21 = vmul.f32 %v1390_v18, %v2650_v28  ;;  %v1395_v23 = vmul.f32 %v1611_v46, %v1394_v16 }
 0x570   :  { %v1410_v25 = vadd.f32 %v1409_v19, %v1408_v21  ;;  %v1396_v27 = vadd.f32 %v1611_v46, %v1395_v23 }
 0x572   :  { %1614 = vtanh.f32 %v1410_v25  ;;  %v1400_v32 = vsel %vm1399_vm14, %v1611_v46, %v1396_v27 }
 0x573   :  { %v1405_v29 = vsel %vm1402_vm15, %v1404_v10, %v1400_v32 }
 0x578   :  { %v1615_v14 = vpop.eup %1614 }
 0x579   :  { %v1412_v13 = vmul.f32 %v1615_v14, %v1405_v29 }
 0x57b   :  { %v1417_v28 = vmul.f32 %v1486_v8, %v1412_v13 }
 0x57d   :  { %v1419_v17 = vsel %vm1418_vm0, %v1417_v28, 0.0 }
 0x57e   :  { %1420 = vadd.xlane.f32.xlu2 %v1419_v17 }
 0x5f1   :  { %v1421_v2 = vpop.xlane.xlu2 %1420 }
 0x5f2   :  { %v1426_v31 = vadd.f32 %v1487_v37, %v1421_v2 }
 0x5f4   :  { %v1477_v39 = vmul.f32 -1.442695, %v1426_v31 }
 0x5f6   :  { %1616 = vpow2.f32 %v1477_v39 }
 0x5fc   :  { %v1617_v12 = vpop.eup %1616 }
 0x5fd   :  { %v1430_v53 = vadd.f32 1.0, %v1617_v12 }
 0x5ff   :  { %1618 = vrcp.f32 %v1430_v53  ;;  %v1442_v9 = vand.u32 2147483648, %v1430_v53  ;;  %v1440_v15 = vand.u32 2147483647, %v1430_v53  ;;  %vm1436_vm2 = vweird.f32 %v1430_v53 }
 0x601   :  { %v1443_v20 = vor.u32 1.1754944e-38, %v1442_v9  ;;  %vm1441_vm5 = vcmp.eq.f32.partialorder %v1440_v15, 8.507059e+37 }
 0x605   :  { %v1619_v7 = vpop.eup %1618 }
 0x606   :  { %v1432_v35 = vmul.f32 %v1619_v7, %v1430_v53  ;;  %vm1437_vm1 = vweird.f32 %v1619_v7 }
 0x607   :  { %vm1438_vm4 = vmor %vm1436_vm2, %vm1437_vm1 }
 0x608   :  { %v1433_v36 = vsub.f32 1.0, %v1432_v35 }
 0x60a   :  { %v1434_v6 = vmul.f32 %v1619_v7, %v1433_v36 }
 0x60c   :  { %v1435_v38 = vadd.f32 %v1619_v7, %v1434_v6 }
 0x60e   :  { %v1439_v4 = vsel %vm1438_vm4, %v1619_v7, %v1435_v38 }
 0x60f   :  { %v1444_v22 = vsel %vm1441_vm5, %v1443_v20, %v1439_v4 }
 0x610   :  { %1447 = vst.msk [vmem:[%s2674_s6] sm:$0x3] %vm1446_vm3, %v1444_v22 }
 0x611   :  { %1452 = vsyncpa [#allocation4], 1 }

</bundles_post_ra>
